<compile_context>
chip_gen: v7x
topology: tpu7x:2x2x1
jax: 0.10.0
libtpu: 0.0.40
codegen_flags: <defaults>
</compile_context>

<pallas_src>
import math
import functools

import jax
import jax.numpy as jnp
from jax.experimental import pallas as pl
from jax.experimental.pallas import tpu as pltpu

C = 64           # channels (hardcoded in the PyTorch module)
HID = 4          # ChannAtt hidden channels
HID_PAD = 8      # padded hidden size (extra rows/cols carry zeros -> exact no-op)
TILE_MAX = 4096  # spatial (H*W) tile width in lanes; multiple of 128


# --------------------------- pass 1: reduce + weights ---------------------------
def _reduce_weights_kernel(x_ref, y_ref,
                           w1a_ref, b1a_ref, w2a_ref, b2a_ref,
                           w1b_ref, b1b_ref, w2b_ref, b2b_ref,
                           ab_ref, cbias_ref,
                           pw0_ref, pw1_ref,
                           sx_ref, sy_ref,
                           *, hw, tile):
    t = pl.program_id(1)

    @pl.when(t == 0)
    def _init():
        sx_ref[...] = jnp.zeros_like(sx_ref)
        sy_ref[...] = jnp.zeros_like(sy_ref)

    xf = x_ref[0].astype(jnp.float32)            # (C, tile), lanes = spatial
    yf = y_ref[0].astype(jnp.float32)

    if hw % tile != 0:                           # static: mask the ragged edge tile
        col = jax.lax.broadcasted_iota(jnp.int32, (C, tile), 1) + t * tile
        valid = col < hw
        xf = jnp.where(valid, xf, 0.0)
        yf = jnp.where(valid, yf, 0.0)

    sx_ref[...] += jnp.sum(xf, axis=1, keepdims=True)      # (C, 1) f32 accumulators
    sy_ref[...] += jnp.sum(yf, axis=1, keepdims=True)

    @pl.when(t == pl.num_programs(1) - 1)
    def _finalize():
        inv_hw = jnp.float32(1.0 / hw)
        # (C, 2) = [mean(x), mean(y)] as columns (AdaptiveAvgPool2d(1)).
        m2 = jnp.concatenate([sx_ref[...], sy_ref[...]], axis=1) * inv_hw

        def chann_att_pool(w1, b1, w2, b2):
            # ChannAtt on a 1x1 pooled map == center-tap matmuls. Both pooled
            # means share each MXU push; only the matching column is used.
            h = jnp.maximum(
                jnp.dot(w1[...], m2, preferred_element_type=jnp.float32) + b1[...], 0.0)  # (8, 2)
            z = jnp.dot(w2[...], h, preferred_element_type=jnp.float32) + b2[...]         # (C, 2)
            s = 1.0 / (1.0 + jnp.exp(-z))                    # sigmoid channel scale
            return s * m2                                    # == pool(att(.)) per column

        px = chann_att_pool(w1a_ref, b1a_ref, w2a_ref, b2a_ref)[:, 0:1]   # (C,1) pool(att0(x))
        py = chann_att_pool(w1b_ref, b1b_ref, w2b_ref, b2b_ref)[:, 1:2]   # (C,1) pool(att1(y))

        # (3,1) valid conv on cat([py,px,py,px]) -> two logit columns, one MXU push:
        #   ab = [A | B] with A = W0+W2, B = W1;  rhs = [[py,px],[px,py]]  -> (2C, 2)
        rhs = jnp.concatenate(
            [jnp.concatenate([py, px], axis=1),
             jnp.concatenate([px, py], axis=1)], axis=0)
        o = jnp.dot(ab_ref[...], rhs, preferred_element_type=jnp.float32) + cbias_ref[...]  # (C, 2)

        # 2 * softmax over the two logit columns (exact divide -> no approx error).
        mmax = jnp.max(o, axis=1, keepdims=True)
        e = jnp.exp(o - mmax)
        pw = (2.0 * e) / jnp.sum(e, axis=1, keepdims=True)    # (C, 2)
        pw0_ref[0] = pw[:, 0:1]
        pw1_ref[0] = pw[:, 1:2]


# ------------------------------ pass 2: blend apply ------------------------------
def _apply_kernel(x_ref, y_ref, pw0_ref, pw1_ref, o_ref):
    w0 = pw0_ref[0]                              # (C, 1) blend weight for x
    w1 = pw1_ref[0]                              # (C, 1) blend weight for y
    xf = x_ref[0].astype(jnp.float32)            # (C, tile), lane-dense
    yf = y_ref[0].astype(jnp.float32)
    o_ref[0] = (xf * w0 + yf * w1).astype(o_ref.dtype)


# ----------------------------------- wrapper -----------------------------------
def feature_att2_pallas(x_nchw, y_nchw, p, *, tile=None):
    N, cin, H, W = x_nchw.shape
    assert cin == C, "module hardcodes 64 channels"
    hw = H * W

    if tile is None:
        tile = hw if hw <= TILE_MAX else TILE_MAX
    assert tile == hw or tile % 128 == 0, "spatial tile must be lane-aligned"
    n_tiles = pl.cdiv(hw, tile)

    # (N, C, H, W) -> (N, C, H*W): free view of contiguous NCHW; lanes = spatial.
    x = x_nchw.reshape(N, C, hw)
    y = y_nchw.reshape(N, C, hw)

    # --- parameter prep (column-oriented: weight @ pooled-column, no transposes) ---
    def center(w):                                # (O, I, 3, 3) -> (O, I) center tap
        return w[:, :, 1, 1]

    def att_params(prefix):
        w1 = jnp.pad(center(p[prefix + "_c1_w"]), ((0, HID_PAD - HID), (0, 0)))   # (8, 64)
        b1 = jnp.pad(p[prefix + "_c1_b"][:, None], ((0, HID_PAD - HID), (0, 0)))  # (8, 1)
        w2 = jnp.pad(center(p[prefix + "_c2_w"]), ((0, 0), (0, HID_PAD - HID)))   # (64, 8)
        b2 = p[prefix + "_c2_b"][:, None]                                         # (64, 1)
        return w1, b1, w2, b2

    w1a, b1a, w2a, b2a = att_params("att0")
    w1b, b1b, w2b, b2b = att_params("att1")

    cw = p["conv_w"]                                                 # (64, 64, 3, 1)
    ab = jnp.concatenate([cw[:, :, 0, 0] + cw[:, :, 2, 0],           # A = W0 + W2
                          cw[:, :, 1, 0]], axis=1)                   # B = W1     -> (64, 128)
    cbias = p["conv_b"][:, None]                                     # (64, 1)

    def wspec(shape):
        return pl.BlockSpec(shape, lambda n, t: (0, 0))

    img_spec = pl.BlockSpec((1, C, tile), lambda n, t: (n, 0, t))
    col_spec = pl.BlockSpec((1, C, 1), lambda n, t: (n, 0, 0))

    # ---------- pass 1: tiled pooling reduce + per-image blend-weight compute ----------
    pw0, pw1 = pl.pallas_call(
        functools.partial(_reduce_weights_kernel, hw=hw, tile=tile),
        out_shape=(jax.ShapeDtypeStruct((N, C, 1), jnp.float32),
                   jax.ShapeDtypeStruct((N, C, 1), jnp.float32)),
        grid_spec=pltpu.PrefetchScalarGridSpec(
            num_scalar_prefetch=0,
            grid=(N, n_tiles),
            in_specs=[
                img_spec, img_spec,
                wspec((HID_PAD, C)), wspec((HID_PAD, 1)),
                wspec((C, HID_PAD)), wspec((C, 1)),
                wspec((HID_PAD, C)), wspec((HID_PAD, 1)),
                wspec((C, HID_PAD)), wspec((C, 1)),
                wspec((C, 2 * C)), wspec((C, 1)),
            ],
            out_specs=(col_spec, col_spec),
            scratch_shapes=[pltpu.VMEM((C, 1), jnp.float32),
                            pltpu.VMEM((C, 1), jnp.float32)],
        ),
        compiler_params=pltpu.CompilerParams(
            dimension_semantics=("parallel", "arbitrary")),
    )(x, y, w1a, b1a, w2a, b2a, w1b, b1b, w2b, b2b, ab, cbias)

    # ---------- pass 2: tiled, lane-dense blend apply ----------
    out = pl.pallas_call(
        _apply_kernel,
        out_shape=jax.ShapeDtypeStruct((N, C, hw), x.dtype),
        grid_spec=pltpu.PrefetchScalarGridSpec(
            num_scalar_prefetch=0,
            grid=(N, n_tiles),
            in_specs=[img_spec, img_spec, col_spec, col_spec],
            out_specs=img_spec,
        ),
        compiler_params=pltpu.CompilerParams(
            dimension_semantics=("parallel", "parallel")),
    )(x, y, pw0, pw1)

    return out.reshape(N, C, H, W)


# ---------------- deterministic parameter init (shapes from __init__) ----------------
def init_params(key):
    ks = jax.random.split(key, 10)

    def conv_init(k, shape):
        fan_in = shape[1] * shape[2] * shape[3]
        bound = 1.0 / math.sqrt(fan_in)
        return jax.random.uniform(k, shape, jnp.float32, -bound, bound)

    def bias_init(k, n, fan_in):
        bound = 1.0 / math.sqrt(fan_in)
        return jax.random.uniform(k, (n,), jnp.float32, -bound, bound)

    return {
        "att0_c1_w": conv_init(ks[0], (4, 64, 3, 3)),
        "att0_c1_b": bias_init(ks[1], 4, 64 * 9),
        "att0_c2_w": conv_init(ks[2], (64, 4, 3, 3)),
        "att0_c2_b": bias_init(ks[3], 64, 4 * 9),
        "att1_c1_w": conv_init(ks[4], (4, 64, 3, 3)),
        "att1_c1_b": bias_init(ks[5], 4, 64 * 9),
        "att1_c2_w": conv_init(ks[6], (64, 4, 3, 3)),
        "att1_c2_b": bias_init(ks[7], 64, 4 * 9),
        "conv_w": conv_init(ks[8], (64, 64, 3, 1)),
        "conv_b": bias_init(ks[9], 64, 64 * 3),
    }


# ---------------- pure-JAX reference (NCHW, mirrors the PyTorch forward) ----------------
def feature_att2_ref(x, y, p):
    def chann_att(xf, w1, b1, w2, b2):
        pooled = jnp.mean(xf, axis=(2, 3), keepdims=True)                       # (N,64,1,1)
        h = jnp.einsum("nchw,oc->nohw", pooled, w1[:, :, 1, 1]) + b1[None, :, None, None]
        h = jnp.maximum(h, 0.0)
        z = jnp.einsum("nchw,oc->nohw", h, w2[:, :, 1, 1]) + b2[None, :, None, None]
        return xf * jax.nn.sigmoid(z)

    ax = chann_att(x, p["att0_c1_w"], p["att0_c1_b"], p["att0_c2_w"], p["att0_c2_b"])
    ay = chann_att(y, p["att1_c1_w"], p["att1_c1_b"], p["att1_c2_w"], p["att1_c2_b"])
    px = jnp.mean(ax, axis=(2, 3), keepdims=True)                               # (N,64,1,1)
    py = jnp.mean(ay, axis=(2, 3), keepdims=True)
    pf = jnp.concatenate([py, px, py, px], axis=2)                              # (N,64,4,1)

    cw = p["conv_w"][:, :, :, 0]                                                # (64,64,3)
    logits = []
    for hpos in range(2):                                                       # valid (3,1) conv
        window = pf[:, :, hpos:hpos + 3, 0]                                     # (N,64,3)
        logits.append(jnp.einsum("nck,ock->no", window, cw) + p["conv_b"][None, :])
    logits = jnp.stack(logits, axis=2)                                          # (N,64,2)
    pw = jax.nn.softmax(logits, axis=2) * 2.0

    fea = jnp.stack([x, y], axis=2) * pw[:, :, :, None, None]
    return jnp.sum(fea, axis=2)


if __name__ == "__main__":
    key = jax.random.PRNGKey(0)
    kx, ky, kp = jax.random.split(key, 3)
    params = init_params(kp)

    def check(n, h, w, tile=None):
        kxi = jax.random.fold_in(kx, h * 100 + w)
        kyi = jax.random.fold_in(ky, h * 100 + w)
        x = jax.random.normal(kxi, (n, C, h, w), jnp.float32)
        y = jax.random.normal(kyi, (n, C, h, w), jnp.float32)
        out = jax.block_until_ready(feature_att2_pallas(x, y, params, tile=tile))
        ref = feature_att2_ref(x, y, params)
        assert out.shape == (n, C, h, w)
        err = float(jnp.max(jnp.abs(out - ref)))
        assert jnp.allclose(out, ref, rtol=1e-4, atol=1e-4), err

    check(2, 16, 16)             # single spatial tile (tile == H*W)
    check(1, 32, 32, tile=128)   # multi-tile reduce + apply path
    check(1, 18, 18, tile=128)   # multi-tile with ragged (masked) edge tile

    print("KERNEL_OK")
</pallas_src>

<mosaic_0001>
module attributes {stable_mosaic.version = 11 : i64} {
  func.func @_reduce_weights_kernel(%arg0: i32, %arg1: i32, %arg2: memref<1x64x256xf32, #tpu.memory_space<vmem>>, %arg3: memref<1x64x256xf32, #tpu.memory_space<vmem>>, %arg4: memref<8x64xf32, #tpu.memory_space<vmem>>, %arg5: memref<8x1xf32, #tpu.memory_space<vmem>>, %arg6: memref<64x8xf32, #tpu.memory_space<vmem>>, %arg7: memref<64x1xf32, #tpu.memory_space<vmem>>, %arg8: memref<8x64xf32, #tpu.memory_space<vmem>>, %arg9: memref<8x1xf32, #tpu.memory_space<vmem>>, %arg10: memref<64x8xf32, #tpu.memory_space<vmem>>, %arg11: memref<64x1xf32, #tpu.memory_space<vmem>>, %arg12: memref<64x128xf32, #tpu.memory_space<vmem>>, %arg13: memref<64x1xf32, #tpu.memory_space<vmem>>, %arg14: memref<1x64x1xf32, #tpu.memory_space<vmem>>, %arg15: memref<1x64x1xf32, #tpu.memory_space<vmem>>, %arg16: memref<64x1xf32, #tpu.memory_space<vmem>>, %arg17: memref<64x1xf32, #tpu.memory_space<vmem>>) attributes {dimension_semantics = [#tpu.dimension_semantics<parallel>, #tpu.dimension_semantics<arbitrary>], iteration_bounds = array<i64: 2, 1>, scalar_prefetch = 0 : i64, scratch_operands = 2 : i64, tpu.core_type = #tpu.core_type<tc>, window_params = [{transform_indices = @transform_0, window_bounds = array<i64: 1, 64, 256>}, {transform_indices = @transform_1, window_bounds = array<i64: 1, 64, 256>}, {pipeline_mode = #tpu.pipeline_mode<synchronous>, transform_indices = @transform_2, window_bounds = array<i64: 8, 64>}, {pipeline_mode = #tpu.pipeline_mode<synchronous>, transform_indices = @transform_3, window_bounds = array<i64: 8, 1>}, {pipeline_mode = #tpu.pipeline_mode<synchronous>, transform_indices = @transform_4, window_bounds = array<i64: 64, 8>}, {pipeline_mode = #tpu.pipeline_mode<synchronous>, transform_indices = @transform_5, window_bounds = array<i64: 64, 1>}, {pipeline_mode = #tpu.pipeline_mode<synchronous>, transform_indices = @transform_6, window_bounds = array<i64: 8, 64>}, {pipeline_mode = #tpu.pipeline_mode<synchronous>, transform_indices = @transform_7, window_bounds = array<i64: 8, 1>}, {pipeline_mode = #tpu.pipeline_mode<synchronous>, transform_indices = @transform_8, window_bounds = array<i64: 64, 8>}, {pipeline_mode = #tpu.pipeline_mode<synchronous>, transform_indices = @transform_9, window_bounds = array<i64: 64, 1>}, {pipeline_mode = #tpu.pipeline_mode<synchronous>, transform_indices = @transform_10, window_bounds = array<i64: 64, 128>}, {pipeline_mode = #tpu.pipeline_mode<synchronous>, transform_indices = @transform_11, window_bounds = array<i64: 64, 1>}, {transform_indices = @transform_12, window_bounds = array<i64: 1, 64, 1>}, {transform_indices = @transform_13, window_bounds = array<i64: 1, 64, 1>}]} {
    %c0_i32 = arith.constant 0 : i32
    %0 = arith.cmpi eq, %arg1, %c0_i32 : i32
    %1 = arith.extui %0 : i1 to i32
    %c0_i32_0 = arith.constant 0 : i32
    %2 = arith.cmpi ne, %1, %c0_i32_0 : i32
    scf.if %2 {
      %cst_17 = arith.constant 0.000000e+00 : f32
      %20 = vector.broadcast %cst_17 : f32 to vector<64x1xf32>
      %c0_18 = arith.constant 0 : index
      %c0_19 = arith.constant 0 : index
      %21 = vector.load %arg16[%c0_18, %c0_19] : memref<64x1xf32, #tpu.memory_space<vmem>>, vector<64x1xf32>
      tpu.vector_store %arg16[%c0_18, %c0_19], %20 {strides = array<i32>} : memref<64x1xf32, #tpu.memory_space<vmem>>, vector<64x1xf32>,
      %cst_20 = arith.constant 0.000000e+00 : f32
      %22 = vector.broadcast %cst_20 : f32 to vector<64x1xf32>
      %c0_21 = arith.constant 0 : index
      %c0_22 = arith.constant 0 : index
      %23 = vector.load %arg17[%c0_21, %c0_22] : memref<64x1xf32, #tpu.memory_space<vmem>>, vector<64x1xf32>
      tpu.vector_store %arg17[%c0_21, %c0_22], %22 {strides = array<i32>} : memref<64x1xf32, #tpu.memory_space<vmem>>, vector<64x1xf32>,
    } else {
    }
    %c0 = arith.constant 0 : index
    %c0_1 = arith.constant 0 : index
    %c0_2 = arith.constant 0 : index
    %3 = vector.load %arg2[%c0, %c0_1, %c0_2] : memref<1x64x256xf32, #tpu.memory_space<vmem>>, vector<1x64x256xf32>
    %4 = vector.shape_cast %3 : vector<1x64x256xf32> to vector<64x256xf32>
    %c0_3 = arith.constant 0 : index
    %c0_4 = arith.constant 0 : index
    %c0_5 = arith.constant 0 : index
    %5 = vector.load %arg3[%c0_3, %c0_4, %c0_5] : memref<1x64x256xf32, #tpu.memory_space<vmem>>, vector<1x64x256xf32>
    %6 = vector.shape_cast %5 : vector<1x64x256xf32> to vector<64x256xf32>
    %c0_6 = arith.constant 0 : index
    %c0_7 = arith.constant 0 : index
    %7 = vector.load %arg16[%c0_6, %c0_7] : memref<64x1xf32, #tpu.memory_space<vmem>>, vector<64x1xf32>
    %cst = arith.constant dense<0.000000e+00> : vector<64xf32>
    %8 = vector.multi_reduction <add>, %4, %cst [1] : vector<64x256xf32> to vector<64xf32>
    %9 = vector.shape_cast %8 : vector<64xf32> to vector<64x1xf32>
    %10 = arith.addf %7, %9 : vector<64x1xf32>
    %c0_8 = arith.constant 0 : index
    %c0_9 = arith.constant 0 : index
    %11 = vector.load %arg16[%c0_8, %c0_9] : memref<64x1xf32, #tpu.memory_space<vmem>>, vector<64x1xf32>
    tpu.vector_store %arg16[%c0_8, %c0_9], %10 {strides = array<i32>} : memref<64x1xf32, #tpu.memory_space<vmem>>, vector<64x1xf32>,
    %c0_10 = arith.constant 0 : index
    %c0_11 = arith.constant 0 : index
    %12 = vector.load %arg17[%c0_10, %c0_11] : memref<64x1xf32, #tpu.memory_space<vmem>>, vector<64x1xf32>
    %cst_12 = arith.constant dense<0.000000e+00> : vector<64xf32>
    %13 = vector.multi_reduction <add>, %6, %cst_12 [1] : vector<64x256xf32> to vector<64xf32>
    %14 = vector.shape_cast %13 : vector<64xf32> to vector<64x1xf32>
    %15 = arith.addf %12, %14 : vector<64x1xf32>
    %c0_13 = arith.constant 0 : index
    %c0_14 = arith.constant 0 : index
    %16 = vector.load %arg17[%c0_13, %c0_14] : memref<64x1xf32, #tpu.memory_space<vmem>>, vector<64x1xf32>
    tpu.vector_store %arg17[%c0_13, %c0_14], %15 {strides = array<i32>} : memref<64x1xf32, #tpu.memory_space<vmem>>, vector<64x1xf32>,
    %c0_i32_15 = arith.constant 0 : i32
    %17 = arith.cmpi eq, %arg1, %c0_i32_15 : i32
    %18 = arith.extui %17 : i1 to i32
    %c0_i32_16 = arith.constant 0 : i32
    %19 = arith.cmpi ne, %18, %c0_i32_16 : i32
    scf.if %19 {
      %c0_17 = arith.constant 0 : index
      %c0_18 = arith.constant 0 : index
      %20 = vector.load %arg16[%c0_17, %c0_18] : memref<64x1xf32, #tpu.memory_space<vmem>>, vector<64x1xf32>
      %c0_19 = arith.constant 0 : index
      %c0_20 = arith.constant 0 : index
      %21 = vector.load %arg17[%c0_19, %c0_20] : memref<64x1xf32, #tpu.memory_space<vmem>>, vector<64x1xf32>
      %22 = tpu.concatenate %20, %21 in 1 : vector<64x1xf32>, vector<64x1xf32> -> vector<64x2xf32>
      %cst_21 = arith.constant 3.906250e-03 : f32
      %23 = vector.broadcast %cst_21 : f32 to vector<64x2xf32>
      %24 = arith.mulf %22, %23 : vector<64x2xf32>
      %c0_22 = arith.constant 0 : index
      %c0_23 = arith.constant 0 : index
      %25 = vector.load %arg4[%c0_22, %c0_23] : memref<8x64xf32, #tpu.memory_space<vmem>>, vector<8x64xf32>
      %cst_24 = arith.constant dense<0.000000e+00> : vector<8x2xf32>
      %26 = tpu.matmul %25, %24, %cst_24 {dimension_numbers = #tpu.dot_dimension_numbers<[1], [0], [0], [1], [0, 0, 1, 1], [], []>} : vector<8x64xf32>, vector<64x2xf32>, vector<8x2xf32> -> vector<8x2xf32>
      %c0_25 = arith.constant 0 : index
      %c0_26 = arith.constant 0 : index
      %27 = vector.load %arg5[%c0_25, %c0_26] : memref<8x1xf32, #tpu.memory_space<vmem>>, vector<8x1xf32>
      %28 = vector.broadcast %27 : vector<8x1xf32> to vector<8x2xf32>
      %29 = arith.addf %26, %28 : vector<8x2xf32>
      %cst_27 = arith.constant 0.000000e+00 : f32
      %30 = vector.broadcast %cst_27 : f32 to vector<8x2xf32>
      %31 = arith.maximumf %29, %30 : vector<8x2xf32>
      %c0_28 = arith.constant 0 : index
      %c0_29 = arith.constant 0 : index
      %32 = vector.load %arg6[%c0_28, %c0_29] : memref<64x8xf32, #tpu.memory_space<vmem>>, vector<64x8xf32>
      %cst_30 = arith.constant dense<0.000000e+00> : vector<64x2xf32>
      %33 = tpu.matmul %32, %31, %cst_30 {dimension_numbers = #tpu.dot_dimension_numbers<[1], [0], [0], [1], [0, 0, 1, 1], [], []>} : vector<64x8xf32>, vector<8x2xf32>, vector<64x2xf32> -> vector<64x2xf32>
      %c0_31 = arith.constant 0 : index
      %c0_32 = arith.constant 0 : index
      %34 = vector.load %arg7[%c0_31, %c0_32] : memref<64x1xf32, #tpu.memory_space<vmem>>, vector<64x1xf32>
      %35 = vector.broadcast %34 : vector<64x1xf32> to vector<64x2xf32>
      %36 = arith.addf %33, %35 : vector<64x2xf32>
      %cst_33 = arith.constant 0.000000e+00 : f32
      %37 = vector.broadcast %cst_33 : f32 to vector<64x2xf32>
      %38 = arith.subf %37, %36 : vector<64x2xf32>
      %39 = math.exp %38 : vector<64x2xf32>
      %cst_34 = arith.constant 1.000000e+00 : f32
      %40 = vector.broadcast %cst_34 : f32 to vector<64x2xf32>
      %41 = arith.addf %40, %39 : vector<64x2xf32>
      %cst_35 = arith.constant 1.000000e+00 : f32
      %42 = vector.broadcast %cst_35 : f32 to vector<64x2xf32>
      %43 = arith.divf %42, %41 : vector<64x2xf32>
      %44 = arith.mulf %43, %24 : vector<64x2xf32>
      %45 = vector.extract_strided_slice %44 {offsets = [0, 0], sizes = [64, 1], strides = [1, 1]} : vector<64x2xf32> to vector<64x1xf32>
      %c0_36 = arith.constant 0 : index
      %c0_37 = arith.constant 0 : index
      %46 = vector.load %arg8[%c0_36, %c0_37] : memref<8x64xf32, #tpu.memory_space<vmem>>, vector<8x64xf32>
      %cst_38 = arith.constant dense<0.000000e+00> : vector<8x2xf32>
      %47 = tpu.matmul %46, %24, %cst_38 {dimension_numbers = #tpu.dot_dimension_numbers<[1], [0], [0], [1], [0, 0, 1, 1], [], []>} : vector<8x64xf32>, vector<64x2xf32>, vector<8x2xf32> -> vector<8x2xf32>
      %c0_39 = arith.constant 0 : index
      %c0_40 = arith.constant 0 : index
      %48 = vector.load %arg9[%c0_39, %c0_40] : memref<8x1xf32, #tpu.memory_space<vmem>>, vector<8x1xf32>
      %49 = vector.broadcast %48 : vector<8x1xf32> to vector<8x2xf32>
      %50 = arith.addf %47, %49 : vector<8x2xf32>
      %cst_41 = arith.constant 0.000000e+00 : f32
      %51 = vector.broadcast %cst_41 : f32 to vector<8x2xf32>
      %52 = arith.maximumf %50, %51 : vector<8x2xf32>
      %c0_42 = arith.constant 0 : index
      %c0_43 = arith.constant 0 : index
      %53 = vector.load %arg10[%c0_42, %c0_43] : memref<64x8xf32, #tpu.memory_space<vmem>>, vector<64x8xf32>
      %cst_44 = arith.constant dense<0.000000e+00> : vector<64x2xf32>
      %54 = tpu.matmul %53, %52, %cst_44 {dimension_numbers = #tpu.dot_dimension_numbers<[1], [0], [0], [1], [0, 0, 1, 1], [], []>} : vector<64x8xf32>, vector<8x2xf32>, vector<64x2xf32> -> vector<64x2xf32>
      %c0_45 = arith.constant 0 : index
      %c0_46 = arith.constant 0 : index
      %55 = vector.load %arg11[%c0_45, %c0_46] : memref<64x1xf32, #tpu.memory_space<vmem>>, vector<64x1xf32>
      %56 = vector.broadcast %55 : vector<64x1xf32> to vector<64x2xf32>
      %57 = arith.addf %54, %56 : vector<64x2xf32>
      %cst_47 = arith.constant 0.000000e+00 : f32
      %58 = vector.broadcast %cst_47 : f32 to vector<64x2xf32>
      %59 = arith.subf %58, %57 : vector<64x2xf32>
      %60 = math.exp %59 : vector<64x2xf32>
      %cst_48 = arith.constant 1.000000e+00 : f32
      %61 = vector.broadcast %cst_48 : f32 to vector<64x2xf32>
      %62 = arith.addf %61, %60 : vector<64x2xf32>
      %cst_49 = arith.constant 1.000000e+00 : f32
      %63 = vector.broadcast %cst_49 : f32 to vector<64x2xf32>
      %64 = arith.divf %63, %62 : vector<64x2xf32>
      %65 = arith.mulf %64, %24 : vector<64x2xf32>
      %66 = vector.extract_strided_slice %65 {offsets = [0, 1], sizes = [64, 1], strides = [1, 1]} : vector<64x2xf32> to vector<64x1xf32>
      %67 = tpu.concatenate %66, %45 in 1 : vector<64x1xf32>, vector<64x1xf32> -> vector<64x2xf32>
      %68 = tpu.concatenate %45, %66 in 1 : vector<64x1xf32>, vector<64x1xf32> -> vector<64x2xf32>
      %69 = tpu.concatenate %67, %68 in 0 : vector<64x2xf32>, vector<64x2xf32> -> vector<128x2xf32>
      %c0_50 = arith.constant 0 : index
      %c0_51 = arith.constant 0 : index
      %70 = vector.load %arg12[%c0_50, %c0_51] : memref<64x128xf32, #tpu.memory_space<vmem>>, vector<64x128xf32>
      %cst_52 = arith.constant dense<0.000000e+00> : vector<64x2xf32>
      %71 = tpu.matmul %70, %69, %cst_52 {dimension_numbers = #tpu.dot_dimension_numbers<[1], [0], [0], [1], [0, 0, 1, 1], [], []>} : vector<64x128xf32>, vector<128x2xf32>, vector<64x2xf32> -> vector<64x2xf32>
      %c0_53 = arith.constant 0 : index
      %c0_54 = arith.constant 0 : index
      %72 = vector.load %arg13[%c0_53, %c0_54] : memref<64x1xf32, #tpu.memory_space<vmem>>, vector<64x1xf32>
      %73 = vector.broadcast %72 : vector<64x1xf32> to vector<64x2xf32>
      %74 = arith.addf %71, %73 : vector<64x2xf32>
      %cst_55 = arith.constant dense<0xFF800000> : vector<64xf32>
      %75 = vector.multi_reduction <maximumf>, %74, %cst_55 [1] : vector<64x2xf32> to vector<64xf32>
      %76 = vector.shape_cast %75 : vector<64xf32> to vector<64x1xf32>
      %77 = vector.broadcast %76 : vector<64x1xf32> to vector<64x2xf32>
      %78 = arith.subf %74, %77 : vector<64x2xf32>
      %79 = math.exp %78 : vector<64x2xf32>
      %cst_56 = arith.constant 2.000000e+00 : f32
      %80 = vector.broadcast %cst_56 : f32 to vector<64x2xf32>
      %81 = arith.mulf %80, %79 : vector<64x2xf32>
      %cst_57 = arith.constant dense<0.000000e+00> : vector<64xf32>
      %82 = vector.multi_reduction <add>, %79, %cst_57 [1] : vector<64x2xf32> to vector<64xf32>
      %83 = vector.shape_cast %82 : vector<64xf32> to vector<64x1xf32>
      %84 = vector.broadcast %83 : vector<64x1xf32> to vector<64x2xf32>
      %85 = arith.divf %81, %84 : vector<64x2xf32>
      %86 = vector.extract_strided_slice %85 {offsets = [0, 0], sizes = [64, 1], strides = [1, 1]} : vector<64x2xf32> to vector<64x1xf32>
      %c0_58 = arith.constant 0 : index
      %c0_59 = arith.constant 0 : index
      %c0_60 = arith.constant 0 : index
      %87 = vector.load %arg14[%c0_58, %c0_59, %c0_60] : memref<1x64x1xf32, #tpu.memory_space<vmem>>, vector<1x64x1xf32>
      %88 = vector.shape_cast %87 : vector<1x64x1xf32> to vector<64x1xf32>
      %89 = vector.shape_cast %86 : vector<64x1xf32> to vector<1x64x1xf32>
      tpu.vector_store %arg14[%c0_58, %c0_59, %c0_60], %89 {strides = array<i32>} : memref<1x64x1xf32, #tpu.memory_space<vmem>>, vector<1x64x1xf32>,
      %90 = vector.extract_strided_slice %85 {offsets = [0, 1], sizes = [64, 1], strides = [1, 1]} : vector<64x2xf32> to vector<64x1xf32>
      %c0_61 = arith.constant 0 : index
      %c0_62 = arith.constant 0 : index
      %c0_63 = arith.constant 0 : index
      %91 = vector.load %arg15[%c0_61, %c0_62, %c0_63] : memref<1x64x1xf32, #tpu.memory_space<vmem>>, vector<1x64x1xf32>
      %92 = vector.shape_cast %91 : vector<1x64x1xf32> to vector<64x1xf32>
      %93 = vector.shape_cast %90 : vector<64x1xf32> to vector<1x64x1xf32>
      tpu.vector_store %arg15[%c0_61, %c0_62, %c0_63], %93 {strides = array<i32>} : memref<1x64x1xf32, #tpu.memory_space<vmem>>, vector<1x64x1xf32>,
    } else {
    }
    return
  }
  func.func @transform_0(%arg0: i32, %arg1: i32) -> (i32, i32, i32) {
    %c0_i32 = arith.constant 0 : i32
    %c0_i32_0 = arith.constant 0 : i32
    return %arg0, %c0_i32, %arg1 : i32, i32, i32
  }
  func.func @transform_1(%arg0: i32, %arg1: i32) -> (i32, i32, i32) {
    %c0_i32 = arith.constant 0 : i32
    %c0_i32_0 = arith.constant 0 : i32
    return %arg0, %c0_i32, %arg1 : i32, i32, i32
  }
  func.func @transform_2(%arg0: i32, %arg1: i32) -> (i32, i32) {
    %c0_i32 = arith.constant 0 : i32
    %c0_i32_0 = arith.constant 0 : i32
    %c0_i32_1 = arith.constant 0 : i32
    return %c0_i32, %c0_i32_0 : i32, i32
  }
  func.func @transform_3(%arg0: i32, %arg1: i32) -> (i32, i32) {
    %c0_i32 = arith.constant 0 : i32
    %c0_i32_0 = arith.constant 0 : i32
    %c0_i32_1 = arith.constant 0 : i32
    return %c0_i32, %c0_i32_0 : i32, i32
  }
  func.func @transform_4(%arg0: i32, %arg1: i32) -> (i32, i32) {
    %c0_i32 = arith.constant 0 : i32
    %c0_i32_0 = arith.constant 0 : i32
    %c0_i32_1 = arith.constant 0 : i32
    return %c0_i32, %c0_i32_0 : i32, i32
  }
  func.func @transform_5(%arg0: i32, %arg1: i32) -> (i32, i32) {
    %c0_i32 = arith.constant 0 : i32
    %c0_i32_0 = arith.constant 0 : i32
    %c0_i32_1 = arith.constant 0 : i32
    return %c0_i32, %c0_i32_0 : i32, i32
  }
  func.func @transform_6(%arg0: i32, %arg1: i32) -> (i32, i32) {
    %c0_i32 = arith.constant 0 : i32
    %c0_i32_0 = arith.constant 0 : i32
    %c0_i32_1 = arith.constant 0 : i32
    return %c0_i32, %c0_i32_0 : i32, i32
  }
  func.func @transform_7(%arg0: i32, %arg1: i32) -> (i32, i32) {
    %c0_i32 = arith.constant 0 : i32
    %c0_i32_0 = arith.constant 0 : i32
    %c0_i32_1 = arith.constant 0 : i32
    return %c0_i32, %c0_i32_0 : i32, i32
  }
  func.func @transform_8(%arg0: i32, %arg1: i32) -> (i32, i32) {
    %c0_i32 = arith.constant 0 : i32
    %c0_i32_0 = arith.constant 0 : i32
    %c0_i32_1 = arith.constant 0 : i32
    return %c0_i32, %c0_i32_0 : i32, i32
  }
  func.func @transform_9(%arg0: i32, %arg1: i32) -> (i32, i32) {
    %c0_i32 = arith.constant 0 : i32
    %c0_i32_0 = arith.constant 0 : i32
    %c0_i32_1 = arith.constant 0 : i32
    return %c0_i32, %c0_i32_0 : i32, i32
  }
  func.func @transform_10(%arg0: i32, %arg1: i32) -> (i32, i32) {
    %c0_i32 = arith.constant 0 : i32
    %c0_i32_0 = arith.constant 0 : i32
    %c0_i32_1 = arith.constant 0 : i32
    return %c0_i32, %c0_i32_0 : i32, i32
  }
  func.func @transform_11(%arg0: i32, %arg1: i32) -> (i32, i32) {
    %c0_i32 = arith.constant 0 : i32
    %c0_i32_0 = arith.constant 0 : i32
    %c0_i32_1 = arith.constant 0 : i32
    return %c0_i32, %c0_i32_0 : i32, i32
  }
  func.func @transform_12(%arg0: i32, %arg1: i32) -> (i32, i32, i32) {
    %c0_i32 = arith.constant 0 : i32
    %c0_i32_0 = arith.constant 0 : i32
    %c0_i32_1 = arith.constant 0 : i32
    return %arg0, %c0_i32, %c0_i32_0 : i32, i32, i32
  }
  func.func @transform_13(%arg0: i32, %arg1: i32) -> (i32, i32, i32) {
    %c0_i32 = arith.constant 0 : i32
    %c0_i32_0 = arith.constant 0 : i32
    %c0_i32_1 = arith.constant 0 : i32
    return %arg0, %c0_i32, %c0_i32_0 : i32, i32, i32
  }
}

</mosaic_0001>

<bundles_post_ra>
// kernel: tpu_custom_call.1
= control target key start
LH: loop header
LB: loop body
LE: loop exit
PB: predicated region body
PF: predicated region fallthrough
CT: control target
= control target key end

     0   :  { %s3093_s0 = inlined_call_operand.vmem [shape: f32[2,64,256], index: 0, kind: input, shape index: {}]   ;;  %s3094_s1 = inlined_call_operand.hbm [shape: f32[2,64,256], index: 1, kind: input, shape index: {}]   ;;  %s3095_s2 = inlined_call_operand.vmem [shape: f32[8,64], index: 2, kind: input, shape index: {}]   ;;  %s3096_s3 = inlined_call_operand.vmem [shape: f32[8,1], index: 3, kind: input, shape index: {}]   ;;  %s3097_s4 = inlined_call_operand.vmem [shape: f32[64,8], index: 4, kind: input, shape index: {}]   ;;  %s3098_s5 = inlined_call_operand.vmem [shape: f32[64,1], index: 5, kind: input, shape index: {}]   ;;  %s3099_s6 = inlined_call_operand.vmem [shape: f32[8,64], index: 6, kind: input, shape index: {}]   ;;  %s3100_s7 = inlined_call_operand.vmem [shape: f32[8,1], index: 7, kind: input, shape index: {}]   ;;  %s3101_s8 = inlined_call_operand.vmem [shape: f32[64,8], index: 8, kind: input, shape index: {}]   ;;  %s3102_s9 = inlined_call_operand.vmem [shape: f32[64,1], index: 9, kind: input, shape index: {}]   ;;  %s3103_s10 = inlined_call_operand.vmem [shape: f32[64,128], index: 10, kind: input, shape index: {}]   ;;  %s3104_s11 = inlined_call_operand.vmem [shape: f32[64,1], index: 11, kind: input, shape index: {}]   ;;  %s3105_s12 = inlined_call_operand.vmem [shape: f32[2,64,1], index: 12, kind: output, shape index: {0}]   ;;  %s3106_s13 = inlined_call_operand.vmem [shape: f32[2,64,1], index: 13, kind: output, shape index: {1}]  }
   0x1   :  { %3107 = sst [smem:[#allocation7_spill]] %s3105_s12 }
   0x2   :  { %3108 = sst [smem:[#allocation8_spill]] %s3106_s13 }
   0x3   :  { %19 = vsyncpa [#allocation5], 0 }
   0x4   :  { %21 = vsyncpa [#allocation5 + $0x1], 0  ;;  %s2532_s25 = smov 0   ;;  %s2534_s26 = smov 0  }
   0x5   :  { %s2536_s27 = smov 0   ;;  %s2538_s28 = smov 0  }
   0x6   :  { %s2540_s29 = smov 0   ;;  %s2542_s30 = smov 0  }
   0x7 LB: > { %s1905_s14 = sadd.s32 4294967295, %s2451_s30   ;;  %s39_s15 = sadd.s32 1, %s2447_s29  ;;  %s2451_s30 = sphi %s2542_s30, %s27_s30   ;;  %s2447_s29 = sphi %s2540_s29, %s3118_s29   ;;  %s2443_s28 = sphi %s2538_s28, %s3117_s28   ;;  %s2439_s27 = sphi %s2536_s27, %s3116_s27   ;;  %s2435_s26 = sphi %s2534_s26, %s3115_s26   ;;  %s2431_s25 = sphi %s2532_s25, %s3114_s25  }
   0x8   : > { %p41_p0 = scmp.ge.s32.totalorder %s39_s15, 2  ;;  %s76_s16 = sadd.s32 1, %s2439_s27 }
   0x9   : > { %p83_p1 = scmp.ne.s32.totalorder %s2439_s27, %s2435_s26  ;;  %p84_p2 = scmp.eq.s32.totalorder %s2451_s30, 0 }
   0xa   : > { %s3120_s15 = smov (%p41_p0, %s39_s15), 0  ;;  %p89_p4 = scmp.ne.s32.totalorder %s2435_s26, %s2431_s25 }
   0xb   : > { %p2568_p3 = por %p84_p2, %p83_p1  ;;  %s71_s18 = ssub.s32 %s2447_s29, %s3120_s15 }
   0xc   : > { %p90_p5 = scmp.eq.s32.totalorder %s1905_s14, 0  ;;  %p74_p6 = scmp.eq.s32.totalorder %s71_s18, 0 }
   0xd   : > { %p2176_p8 = scmp.lt.s32.totalorder %s2451_s30, 2  ;;  %s418_s21 = sand.u32 1, %s2439_s27  }
   0xe   : > { %p2575_p7 = por %p90_p5, %p89_p4  ;;  %s1940_s22 = sshll.u32 %s2447_s29, 11 }
   0xf   : > { %s2581_s20 = scalar_select %p74_p6, %s2439_s27, %s76_s16  }
  0x10   : > { %s1909_s23 = sshll.u32 %s418_s21, 7  ;;  %s2588_s12 = scalar_lea.hbm %s3094_s1, %s1940_s22 }
  0x11   : > { %s422_s25 = scalar_lea.vmem [#allocation4], %s1909_s23  ;;  %p2592_p9 = pnand %p2176_p8, %p2568_p3 }
  0x12   : > { %s431_s14 = sshll.u32 %s422_s25, 4  ;;  %s2598_s16 = scalar_lea.sflag [#allocation5], %s418_s21  ;;  %s2596_s14 = int_to_ptr.vmem [resolvable:$true] %s431_s14 }
  0x13   : > { %s2371_s13 = scalar_lea.hbm %s2588_s12, 2048  ;;  %p2373_p11 = pneg %p2592_p9 }
  0x14   : > { %p2372_p10 = scmp.ne.s32.totalorder %s2588_s12, %s2371_s13  ;;  %s2376_s23 = scalar_lea.hbm %s3094_s1, 4096 }
  0x15   : > { %p2377_p0 = scmp.lt.u32.totalorder %s2588_s12, %s3094_s1  ;;  %p2378_p1 = scmp.lt.u32.totalorder %s2376_s23, %s2371_s13 }
  0x16   : > { %p2374_p12 = pnand %p2373_p11, %p2372_p10  ;;  %p2380_p3 = scmp.lt.u32.totalorder %s2371_s13, %s2588_s12 }
  0x17   : > { %p2379_p2 = por %p2378_p1, %p2377_p0 }
  0x18   : > { %p2375_p13 = pneg %p2374_p12 }
  0x19   : > { %p2381_p4 = por %p2380_p3, %p2379_p2 }
  0x1b   : > { %p2382_p5 = pnand %p2381_p4, %p2375_p13 }
  0x1d   : > { %2385 = shalt.err (!%p2382_p5)
}
  0x1e   : > { %s2386_s21 = scalar_lea.vmem %s2596_s14, 2048  ;;  %s2453_s22 = smov [#allocation4]  }
  0x1f   : > { %p2387_p6 = scmp.ne.s32.totalorder %s2596_s14, %s2386_s21  ;;  %s2391_s17 = sshll.u32 %s2453_s22, 4  ;;  %s2392_s17 = int_to_ptr.vmem [resolvable:$false] %s2391_s17 }
  0x20   : > { %s2393_s24 = scalar_lea.vmem %s2392_s17, 4096  ;;  %p2394_p12 = scmp.lt.s32.totalorder %s2596_s14, %s2392_s17 }
  0x21   : > { %p2389_p8 = pnand %p2387_p6, %p2373_p11  ;;  %p2395_p0 = scmp.lt.s32.totalorder %s2393_s24, %s2386_s21 }
  0x23   : > { %p2390_p10 = pneg %p2389_p8  ;;  %p2396_p1 = por %p2395_p0, %p2394_p12 }
  0x25   : > { %p2397_p2 = pnand %p2396_p1, %p2390_p10 }
  0x27   : > { %2400 = shalt.err (!%p2397_p2)
}
  0x28   : > { %s2454_s13 = smov 256   ;;  %s2455_s23 = smov 16  }
  0x29   : > { %2175 = dma.hbm_to_vmem [thread:$0]  (!%p2592_p9), %s2588_s12, 2048, %s2596_s14, %s2598_s16, %s2454_s13, %s2454_s13, %s2455_s23  }
  0x2a   : > { %p1912_p11 = scmp.ge.s32.totalorder %s2451_s30, 1  ;;  %p439_p13 = scmp.lt.s32.totalorder %s2451_s30, 3 }
  0x2c   : > { %p440_p3 = pnand %p1912_p11, %p439_p13 }
  0x2d   : > { %s445_s25 = sand.u32 (!%p440_p3), 1, %s2435_s26  }
  0x2e   : > { %443 = sbr.rel (%p440_p3) target bundleno = 1648 (0x670), region = 68  ;;  %s1913_s21 = sshll.u32 (!%p440_p3), %s445_s25, 7 }
  0x2f   : > { %s446_s22 = scalar_lea.sflag (!%p440_p3), [#allocation5], %s445_s25  ;;  %s2629_s17 = scalar_lea.vmem (!%p440_p3), [#allocation4], %s1913_s21 }
  0x35   : > { %2426 = dma.done.wait (%p2575_p7), %s446_s22, 2048  }
  0x36   : > { %2428 = vsyncadd (%p2575_p7), %s446_s22, 4294965248  ;;  %vm531_vm0 = vcmask 7168   ;;  %v2456_v0 = vmov 0.0   ;;  %p507_p7 = scmp.lt.s32.totalorder %s2443_s28, 1  ;;  %v564_v1 = vld [vmem:[%s2629_s17] sm:$0xff]  ;;  %v565_v2 = vld [vmem:[%s2629_s17 + $0x8] sm:$0xff] }
  0x37   : > { %540 = vst.msk [vmem:[#allocation3] sm:$0xff] %vm531_vm0, %v2456_v0  ;;  %532 = vst.msk [vmem:[#allocation2] sm:$0xff] %vm531_vm0, %v2456_v0  ;;  %v566_v3 = vld [vmem:[%s2629_s17 + $0x10] sm:$0xff]  ;;  %v637_v4 = vadd.f32 %v565_v2, %v564_v1  ;;  %v567_v5 = vld [vmem:[%s2629_s17 + $0x18] sm:$0xff]  ;;  %v2457_v62 = vmov 0.0|0.0   ;;  %s2458_s16 = smov 1  }
  0x38   : > { %533 = vst.msk [vmem:[#allocation2 + $0x8] sm:$0xff] %vm531_vm0, %v2456_v0  ;;  %534 = vst.msk [vmem:[#allocation2 + $0x10] sm:$0xff] %vm531_vm0, %v2456_v0  ;;  %v568_v6 = vld [vmem:[%s2629_s17 + $0x20] sm:$0xff]  ;;  %v569_v7 = vld [vmem:[%s2629_s17 + $0x28] sm:$0xff]  ;;  %s3122_s28 = smov (!%p507_p7, %s2443_s28), 1  ;;  %v640_v10 = vadd.f32 %v567_v5, %v566_v3  ;;  %2114 = vmatprep.subr.bf16.mxu0 %v2457_v62  ;;  %vm2459_vm1 = vmmov 0  }
  0x39   : > { %535 = vst.msk [vmem:[#allocation2 + $0x18] sm:$0xff] %vm531_vm0, %v2456_v0  ;;  %536 = vst.msk [vmem:[#allocation2 + $0x20] sm:$0xff] %vm531_vm0, %v2456_v0  ;;  %v643_v8 = vadd.f32 %v569_v7, %v568_v6  ;;  %v570_v9 = vld [vmem:[%s2629_s17 + $0x30] sm:$0xff]  ;;  %638 = vadd.xlane.f32.xlu0 %v637_v4  ;;  %v571_v11 = vld [vmem:[%s2629_s17 + $0x38] sm:$0xff]  ;;  %s1941_s12 = sshll.u32 %s3122_s28, 7  ;;  %2020 = vmatprep.mubr.msk.f32.mxu0 %vm2459_vm1, %v2456_v0  ;;  %vm751_vm2 = vcmask 523264  }
  0x3a   : > { %537 = vst.msk [vmem:[#allocation2 + $0x28] sm:$0xff] %vm531_vm0, %v2456_v0  ;;  %538 = vst.msk [vmem:[#allocation2 + $0x30] sm:$0xff] %vm531_vm0, %v2456_v0  ;;  %v572_v12 = vld [vmem:[%s2629_s17 + $0x40] sm:$0xff]  ;;  %v573_v13 = vld [vmem:[%s2629_s17 + $0x48] sm:$0xff]  ;;  %v646_v14 = vadd.f32 %v571_v11, %v570_v9  ;;  %s2691_s18 = scalar_lea.vmem %s3093_s0, %s1941_s12  ;;  %vm882_vm3 = vcmask 64512   ;;  %vm1631_vm4 = vcmask 15360  }
  0x3b   : > { %539 = vst.msk [vmem:[#allocation2 + $0x38] sm:$0xff] %vm531_vm0, %v2456_v0  ;;  %541 = vst.msk [vmem:[#allocation3 + $0x8] sm:$0xff] %vm531_vm0, %v2456_v0  ;;  %644 = vadd.xlane.f32.xlu1 %v643_v8  ;;  %v574_v15 = vld [vmem:[%s2629_s17 + $0x50] sm:$0xff]  ;;  %v575_v16 = vld [vmem:[%s2629_s17 + $0x58] sm:$0xff]  ;;  %v649_v17 = vadd.f32 %v573_v13, %v572_v12  ;;  %s1942_s22 = sshll.u32 %s3122_s28, 6  ;;  %s3112_s19 = sld [smem:[#allocation7_spill]] }
  0x3c   : > { %542 = vst.msk [vmem:[#allocation3 + $0x10] sm:$0xff] %vm531_vm0, %v2456_v0  ;;  %543 = vst.msk [vmem:[#allocation3 + $0x18] sm:$0xff] %vm531_vm0, %v2456_v0  ;;  %v576_v18 = vld [vmem:[%s2629_s17 + $0x60] sm:$0xff]  ;;  %v577_v19 = vld [vmem:[%s2629_s17 + $0x68] sm:$0xff]  ;;  %v652_v20 = vadd.f32 %v575_v16, %v574_v15  ;;  %s3113_s13 = sld [smem:[#allocation8_spill]] }
  0x3d   : > { %544 = vst.msk [vmem:[#allocation3 + $0x20] sm:$0xff] %vm531_vm0, %v2456_v0  ;;  %545 = vst.msk [vmem:[#allocation3 + $0x28] sm:$0xff] %vm531_vm0, %v2456_v0  ;;  %641 = vadd.xlane.f32.xlu0 %v640_v10  ;;  %v578_v21 = vld [vmem:[%s2629_s17 + $0x70] sm:$0xff]  ;;  %v579_v22 = vld [vmem:[%s2629_s17 + $0x78] sm:$0xff]  ;;  %v655_v23 = vadd.f32 %v577_v19, %v576_v18 }
  0x3e   : > { %546 = vst.msk [vmem:[#allocation3 + $0x30] sm:$0xff] %vm531_vm0, %v2456_v0  ;;  %547 = vst.msk [vmem:[#allocation3 + $0x38] sm:$0xff] %vm531_vm0, %v2456_v0  ;;  %v658_v24 = vadd.f32 %v579_v22, %v578_v21  ;;  %v548_v25 = vld [vmem:[%s2691_s18] sm:$0xff]  ;;  %v549_v26 = vld [vmem:[%s2691_s18 + $0x8] sm:$0xff] }
  0x3f   : > { %647 = vadd.xlane.f32.xlu1 %v646_v14  ;;  %v550_v27 = vld [vmem:[%s2691_s18 + $0x10] sm:$0xff]  ;;  %v551_v28 = vld [vmem:[%s2691_s18 + $0x18] sm:$0xff]  ;;  %v588_v29 = vadd.f32 %v549_v26, %v548_v25  ;;  %v552_v31 = vld [vmem:[%s2691_s18 + $0x20] sm:$0xff] }
  0x40   : > { %v591_v30 = vadd.f32 %v551_v28, %v550_v27  ;;  %v553_v32 = vld [vmem:[%s2691_s18 + $0x28] sm:$0xff]  ;;  %v554_v33 = vld [vmem:[%s2691_s18 + $0x30] sm:$0xff]  ;;  %v555_v34 = vld [vmem:[%s2691_s18 + $0x38] sm:$0xff] }
  0x41   : > { %650 = vadd.xlane.f32.xlu0 %v649_v17  ;;  %v594_v35 = vadd.f32 %v553_v32, %v552_v31  ;;  %v597_v36 = vadd.f32 %v555_v34, %v554_v33  ;;  %v556_v37 = vld [vmem:[%s2691_s18 + $0x40] sm:$0xff]  ;;  %v557_v38 = vld [vmem:[%s2691_s18 + $0x48] sm:$0xff]  ;;  %v558_v39 = vld [vmem:[%s2691_s18 + $0x50] sm:$0xff]  ;;  %s3036_s14 = scalar_lea.vmem %s3112_s19, %s1942_s22 }
  0x42   : > { %v559_v40 = vld [vmem:[%s2691_s18 + $0x58] sm:$0xff]  ;;  %v600_v41 = vadd.f32 %v557_v38, %v556_v37  ;;  %v560_v43 = vld [vmem:[%s2691_s18 + $0x60] sm:$0xff]  ;;  %v561_v44 = vld [vmem:[%s2691_s18 + $0x68] sm:$0xff]  ;;  %s526_s23 = scalar_lea.vmem %s3113_s13, %s1942_s22 }
  0x43   : > { %653 = vadd.xlane.f32.xlu1 %v652_v20  ;;  %v603_v42 = vadd.f32 %v559_v40, %v558_v39  ;;  %v562_v45 = vld [vmem:[%s2691_s18 + $0x70] sm:$0xff]  ;;  %v563_v46 = vld [vmem:[%s2691_s18 + $0x78] sm:$0xff]  ;;  %v606_v47 = vadd.f32 %v561_v44, %v560_v43  ;;  %v629_v49 = vld [vmem:[#allocation3] sm:$0xff] }
  0x44   : > { %v609_v48 = vadd.f32 %v563_v46, %v562_v45  ;;  %v631_v50 = vld [vmem:[#allocation3 + $0x10] sm:$0xff]  ;;  %v630_v54 = vld [vmem:[#allocation3 + $0x8] sm:$0xff]  ;;  %v632_v56 = vld [vmem:[#allocation3 + $0x18] sm:$0xff]  ;;  %v2460_v45 = vmov 0  }
  0x45   : > { %656 = vadd.xlane.f32.xlu0 %v655_v23  ;;  %v633_v60 = vld [vmem:[#allocation3 + $0x20] sm:$0xff]  ;;  %v634_v63 = vld [vmem:[#allocation3 + $0x28] sm:$0xff]  ;;  %v635_v5 = vld [vmem:[#allocation3 + $0x30] sm:$0xff]  ;;  %2234 = vset.pattern.permute.xlu1 %v2460_v45 }
  0x46   : > { %v636_v7 = vld [vmem:[#allocation3 + $0x38] sm:$0xff]  ;;  %v580_v13 = vld [vmem:[#allocation2] sm:$0xff]  ;;  %v581_v14 = vld [vmem:[#allocation2 + $0x8] sm:$0xff]  ;;  %2233 = vset.pattern.permute.xlu0 %v2460_v45 }
  0x47   : > { %659 = vadd.xlane.f32.xlu1 %v658_v24  ;;  %v582_v21 = vld [vmem:[#allocation2 + $0x10] sm:$0xff]  ;;  %v583_v22 = vld [vmem:[#allocation2 + $0x18] sm:$0xff]  ;;  %v1069_v43 = vld [vmem:[%s3100_s7] sm:$0xff] }
  0x48   : > { %v587_v37 = vld [vmem:[#allocation2 + $0x38] sm:$0xff]  ;;  %v745_v44 = vld [vmem:[%s3096_s3] sm:$0xff] }
  0x49   : > { %589 = vadd.xlane.f32.xlu0 %v588_v29  ;;  %v584_v29 = vld [vmem:[#allocation2 + $0x20] sm:$0xff]  ;;  %v829_v45 = vld [vmem:[%s3097_s4 + $0x18] sm:$0xff] }
  0x4a   : > { %v834_v46 = vld [vmem:[%s3098_s5] sm:$0xff] }
  0x4b   : > { %592 = vadd.xlane.f32.xlu1 %v591_v30  ;;  %v585_v30 = vld [vmem:[#allocation2 + $0x28] sm:$0xff] }
  0x4d   : > { %595 = vadd.xlane.f32.xlu0 %v594_v35 }
  0x4f   : > { %598 = vadd.xlane.f32.xlu1 %v597_v36  ;;  %v586_v36 = vld [vmem:[#allocation2 + $0x30] sm:$0xff] }
  0x51   : > { %601 = vadd.xlane.f32.xlu0 %v600_v41 }
  0x53   : > { %604 = vadd.xlane.f32.xlu1 %v603_v42 }
  0x55   : > { %607 = vadd.xlane.f32.xlu0 %v606_v47  ;;  %v835_v47 = vld [vmem:[%s3098_s5 + $0x8] sm:$0xff] }
  0x57   : > { %610 = vadd.xlane.f32.xlu1 %v609_v48  ;;  %v1157_v48 = vld [vmem:[%s3102_s9] sm:$0xff] }
  0xc6   : > { %v639_v51 = vpop.xlane.xlu0 %638 }
  0xc7   : > { %v661_v52 = vadd.f32 %v639_v51, %v629_v49  ;;  %v1158_v49 = vld [vmem:[%s3102_s9 + $0x8] sm:$0xff]  ;;  %v837_v51 = vld [vmem:[%s3098_s5 + $0x18] sm:$0xff] }
  0xc8   : > { %v645_v53 = vpop.xlane.xlu1 %644 }
  0xc9   : > { %v663_v55 = vadd.f32 %v645_v53, %v631_v50  ;;  %669 = vst.msk [vmem:[#allocation3] sm:$0xff] %vm531_vm0, %v661_v52  ;;  %v836_v50 = vld [vmem:[%s3098_s5 + $0x10] sm:$0xff]  ;;  %v1160_v53 = vld [vmem:[%s3102_s9 + $0x18] sm:$0xff] }
  0xca   : > { %v642_v57 = vpop.xlane.xlu0 %641  ;;  %v1159_v52 = vld [vmem:[%s3102_s9 + $0x10] sm:$0xff] }
  0xcb   : > { %671 = vst.msk [vmem:[#allocation3 + $0x10] sm:$0xff] %vm531_vm0, %v663_v55  ;;  %v662_v58 = vadd.f32 %v642_v57, %v630_v54  ;;  %v838_v54 = vld [vmem:[%s3098_s5 + $0x20] sm:$0xff]  ;;  %v839_v55 = vld [vmem:[%s3098_s5 + $0x28] sm:$0xff] }
  0xcc   : > { %v648_v59 = vpop.xlane.xlu1 %647  ;;  %v1162_v57 = vld [vmem:[%s3102_s9 + $0x28] sm:$0xff] }
  0xcd   : > { %v664_v61 = vadd.f32 %v648_v59, %v632_v56  ;;  %670 = vst.msk [vmem:[#allocation3 + $0x8] sm:$0xff] %vm531_vm0, %v662_v58  ;;  %v1161_v56 = vld [vmem:[%s3102_s9 + $0x20] sm:$0xff]  ;;  %v840_v58 = vld [vmem:[%s3098_s5 + $0x30] sm:$0xff]  ;;  %v841_v59 = vld [vmem:[%s3098_s5 + $0x38] sm:$0xff] }
  0xce   : > { %v651_v1 = vpop.xlane.xlu0 %650 }
  0xcf   : > { %672 = vst.msk [vmem:[#allocation3 + $0x18] sm:$0xff] %vm531_vm0, %v664_v61  ;;  %v665_v2 = vadd.f32 %v651_v1, %v633_v60  ;;  %v1163_v60 = vld [vmem:[%s3102_s9 + $0x30] sm:$0xff]  ;;  %v1164_v61 = vld [vmem:[%s3102_s9 + $0x38] sm:$0xff] }
  0xd0   : > { %v654_v3 = vpop.xlane.xlu1 %653  ;;  %v688_v4 = vld [vmem:[#allocation3] sm:$0xff] }
  0xd1   : > { %v666_v6 = vadd.f32 %v654_v3, %v634_v63  ;;  %673 = vst.msk [vmem:[#allocation3 + $0x20] sm:$0xff] %vm531_vm0, %v665_v2  ;;  %704 = vrot.lane.b32.xlu0 %v688_v4, %s2458_s16 }
  0xd2   : > { %v657_v8 = vpop.xlane.xlu0 %656  ;;  %v690_v15 = vld [vmem:[#allocation3 + $0x10] sm:$0xff] }
  0xd3   : > { %674 = vst.msk [vmem:[#allocation3 + $0x28] sm:$0xff] %vm531_vm0, %v666_v6  ;;  %v667_v9 = vadd.f32 %v657_v8, %v635_v5 }
  0xd4   : > { %v660_v10 = vpop.xlane.xlu1 %659  ;;  %v689_v11 = vld [vmem:[#allocation3 + $0x8] sm:$0xff] }
  0xd5   : > { %v668_v12 = vadd.f32 %v660_v10, %v636_v7  ;;  %675 = vst.msk [vmem:[#allocation3 + $0x30] sm:$0xff] %vm531_vm0, %v667_v9  ;;  %706 = vrot.lane.b32.xlu1 %v689_v11, %s2458_s16 }
  0xd6   : > { %v590_v16 = vpop.xlane.xlu0 %589  ;;  %v691_v23 = vld [vmem:[#allocation3 + $0x18] sm:$0xff] }
  0xd7   : > { %676 = vst.msk [vmem:[#allocation3 + $0x38] sm:$0xff] %vm531_vm0, %v668_v12  ;;  %v612_v17 = vadd.f32 %v590_v16, %v580_v13 }
  0xd8   : > { %v593_v18 = vpop.xlane.xlu1 %592  ;;  %v692_v19 = vld [vmem:[#allocation3 + $0x20] sm:$0xff] }
  0xd9   : > { %v613_v20 = vadd.f32 %v593_v18, %v581_v14  ;;  %708 = vrot.lane.b32.xlu1 %v690_v15, %s2458_s16  ;;  %712 = vrot.lane.b32.xlu0 %v692_v19, %s2458_s16  ;;  %621 = vst.msk [vmem:[#allocation2] sm:$0xff] %vm531_vm0, %v612_v17 }
  0xda   : > { %v596_v24 = vpop.xlane.xlu0 %595  ;;  %v693_v31 = vld [vmem:[#allocation3 + $0x28] sm:$0xff] }
  0xdb   : > { %622 = vst.msk [vmem:[#allocation2 + $0x8] sm:$0xff] %vm531_vm0, %v613_v20  ;;  %v614_v25 = vadd.f32 %v596_v24, %v582_v21 }
  0xdc   : > { %v599_v26 = vpop.xlane.xlu1 %598  ;;  %v694_v27 = vld [vmem:[#allocation3 + $0x30] sm:$0xff] }
  0xdd   : > { %v615_v28 = vadd.f32 %v599_v26, %v583_v22  ;;  %710 = vrot.lane.b32.xlu1 %v691_v23, %s2458_s16  ;;  %716 = vrot.lane.b32.xlu0 %v694_v27, %s2458_s16  ;;  %623 = vst.msk [vmem:[#allocation2 + $0x10] sm:$0xff] %vm531_vm0, %v614_v25 }
  0xde   : > { %v602_v32 = vpop.xlane.xlu0 %601  ;;  %v695_v38 = vld [vmem:[#allocation3 + $0x38] sm:$0xff] }
  0xdf   : > { %624 = vst.msk [vmem:[#allocation2 + $0x18] sm:$0xff] %vm531_vm0, %v615_v28  ;;  %v616_v33 = vadd.f32 %v602_v32, %v584_v29 }
  0xe0   : > { %v605_v34 = vpop.xlane.xlu1 %604  ;;  %v680_v1 = vld [vmem:[#allocation2] sm:$0xff] }
  0xe1   : > { %v617_v35 = vadd.f32 %v605_v34, %v585_v30  ;;  %714 = vrot.lane.b32.xlu1 %v693_v31, %s2458_s16  ;;  %625 = vst.msk [vmem:[#allocation2 + $0x20] sm:$0xff] %vm531_vm0, %v616_v33  ;;  %748 = vperm.xlu0 %2233, %v745_v44   ;;  %v828_v44 = vld [vmem:[%s3097_s4 + $0x10] sm:$0xff] }
  0xe2   : > { %v608_v39 = vpop.xlane.xlu0 %607  ;;  %v681_v4 = vld [vmem:[#allocation2 + $0x8] sm:$0xff] }
  0xe3   : > { %626 = vst.msk [vmem:[#allocation2 + $0x28] sm:$0xff] %vm531_vm0, %v617_v35  ;;  %v618_v40 = vadd.f32 %v608_v39, %v586_v36  ;;  %v744_v36 = vld [vmem:[%s3095_s2] sm:$0xff] }
  0xe4   : > { %v611_v41 = vpop.xlane.xlu1 %610  ;;  %v682_v10 = vld [vmem:[#allocation2 + $0x10] sm:$0xff] }
  0xe5   : > { %v619_v42 = vadd.f32 %v611_v41, %v587_v37  ;;  %718 = vrot.lane.b32.xlu1 %v695_v38, %s2458_s16  ;;  %627 = vst.msk [vmem:[#allocation2 + $0x30] sm:$0xff] %vm531_vm0, %v618_v40  ;;  %849 = vperm.xlu0 %2233, %v835_v47   ;;  %v1068_v37 = vld [vmem:[%s3099_s6] sm:$0xff]  ;;  %v831_v47 = vld [vmem:[%s3097_s4 + $0x28] sm:$0xff] }
  0xe6   : > { %v683_v15 = vld [vmem:[#allocation2 + $0x18] sm:$0xff]  ;;  %v826_v38 = vld [vmem:[%s3097_s4] sm:$0xff] }
  0xe7   : > { %628 = vst.msk [vmem:[#allocation2 + $0x38] sm:$0xff] %vm531_vm0, %v619_v42  ;;  %2025 = vmatprep.mubr.msk.f32.mxu1 %vm882_vm3, %v826_v38 }
  0xe8   : > { %v684_v13 = vld [vmem:[#allocation2 + $0x20] sm:$0xff] }
  0xe9   : > { %1072 = vperm.xlu1 %2234, %v1069_v43   ;;  %1172 = vperm.xlu0 %2233, %v1158_v49   ;;  %v827_v43 = vld [vmem:[%s3097_s4 + $0x8] sm:$0xff] }
  0xea   : > { %v685_v23 = vld [vmem:[#allocation2 + $0x28] sm:$0xff] }
  0xec   : > { %v686_v21 = vld [vmem:[#allocation2 + $0x30] sm:$0xff] }
  0xed   : > { %844 = vperm.xlu1 %2234, %v834_v46   ;;  %859 = vperm.xlu0 %2233, %v837_v51   ;;  %v830_v46 = vld [vmem:[%s3097_s4 + $0x20] sm:$0xff]  ;;  %v833_v51 = vld [vmem:[%s3097_s4 + $0x38] sm:$0xff] }
  0xee   : > { %v687_v30 = vld [vmem:[#allocation2 + $0x38] sm:$0xff] }
  0xf1   : > { %1167 = vperm.xlu1 %2234, %v1157_v48   ;;  %1182 = vperm.xlu0 %2233, %v1160_v53   ;;  %v832_v48 = vld [vmem:[%s3097_s4 + $0x30] sm:$0xff] }
  0xf5   : > { %854 = vperm.xlu1 %2234, %v836_v50   ;;  %869 = vperm.xlu0 %2233, %v839_v55   ;;  %v1150_v55 = vld [vmem:[%s3101_s8 + $0x8] sm:$0xff] }
  0xf9   : > { %1177 = vperm.xlu1 %2234, %v1159_v52   ;;  %1192 = vperm.xlu0 %2233, %v1162_v57   ;;  %v1152_v57 = vld [vmem:[%s3101_s8 + $0x18] sm:$0xff] }
  0xfd   : > { %864 = vperm.xlu1 %2234, %v838_v54   ;;  %879 = vperm.xlu0 %2233, %v841_v59   ;;  %v1154_v59 = vld [vmem:[%s3101_s8 + $0x28] sm:$0xff] }
 0x101   : > { %1187 = vperm.xlu1 %2234, %v1161_v56   ;;  %1202 = vperm.xlu0 %2233, %v1164_v61   ;;  %v1151_v56 = vld [vmem:[%s3101_s8 + $0x10] sm:$0xff]  ;;  %v1156_v61 = vld [vmem:[%s3101_s8 + $0x38] sm:$0xff] }
 0x105   : > { %874 = vperm.xlu1 %2234, %v840_v58   ;;  %v1153_v58 = vld [vmem:[%s3101_s8 + $0x20] sm:$0xff] }
 0x109   : > { %1197 = vperm.xlu1 %2234, %v1163_v60   ;;  %v1155_v60 = vld [vmem:[%s3101_s8 + $0x30] sm:$0xff] }
 0x143   : > { %v705_v63 = vpop.permute.xlu0 %704 }
 0x144   : > { %v728_v2 = vsel %vm531_vm0, %v680_v1, %v705_v63 }
 0x145   : > { %v2792_v6 = vmul.f32 0.00390625, %v728_v2 }
 0x147   : > { %v707_v3 = vpop.permute.xlu1 %706 }
 0x148   : > { %v729_v5 = vsel %vm531_vm0, %v681_v4, %v707_v3 }
 0x149   : > { %v2794_v7 = vmul.f32 0.00390625, %v729_v5 }
 0x14b   : > { %v709_v8 = vpop.permute.xlu1 %708  ;;  %v2115_v9 = vpack.c.bf16 %v2794_v7, %v2792_v6  ;;  %v713_v11 = vpop.permute.xlu0 %712 }
 0x14c   : > { %v730_v12 = vsel %vm531_vm0, %v682_v10, %v709_v8  ;;  %v732_v19 = vsel %vm531_vm0, %v684_v13, %v713_v11 }
 0x14d   : > { %2116 = vmatpush3.bf16.msra.mxu0 %v2115_v9  ;;  %v2801_v17 = vmul.f32 0.00390625, %v730_v12  ;;  %v2809_v26 = vmul.f32 0.00390625, %v732_v19 }
 0x14e   : > { %2117 = vmatprep.subr.bf16.mxu0 %v2457_v62 }
 0x14f   : > { %v711_v14 = vpop.permute.xlu1 %710  ;;  %v717_v20 = vpop.permute.xlu0 %716 }
 0x150   : > { %v731_v16 = vsel %vm531_vm0, %v683_v15, %v711_v14  ;;  %v734_v28 = vsel %vm531_vm0, %v686_v21, %v717_v20 }
 0x151   : > { %v2803_v18 = vmul.f32 0.00390625, %v731_v16  ;;  %v2818_v33 = vmul.f32 0.00390625, %v734_v28 }
 0x153   : > { %v715_v22 = vpop.permute.xlu1 %714  ;;  %v2118_v24 = vpack.c.bf16 %v2803_v18, %v2801_v17 }
 0x154   : > { %v733_v25 = vsel %vm531_vm0, %v685_v23, %v715_v22 }
 0x155   : > { %v2811_v27 = vmul.f32 0.00390625, %v733_v25  ;;  %2119 = vmatpush3.bf16.msra.mxu0 %v2118_v24 }
 0x156   : > { %2120 = vmatprep.subr.bf16.mxu0 %v2457_v62 }
 0x157   : > { %v719_v29 = vpop.permute.xlu1 %718  ;;  %v2121_v31 = vpack.c.bf16 %v2811_v27, %v2809_v26 }
 0x158   : > { %v735_v32 = vsel %vm531_vm0, %v687_v30, %v719_v29 }
 0x159   : > { %v2820_v34 = vmul.f32 0.00390625, %v735_v32  ;;  %2122 = vmatpush3.bf16.msra.mxu0 %v2121_v31 }
 0x15a   : > { %2123 = vmatprep.subr.bf16.mxu0 %v2457_v62 }
 0x15b   : > { %v2124_v35 = vpack.c.bf16 %v2820_v34, %v2818_v33 }
 0x15d   : > { %2125 = vmatpush3.bf16.msra.mxu0 %v2124_v35 }
 0x15e   : > { %2126 = vmatprep.subr.bf16.mxu0 %v2457_v62 }
 0x160   : > { %2021 = vmatmul.mubr.msk.f32.vlgmr.msra.gmra.mrb[0].mxu0 %vm751_vm2, %v744_v36 }
 0x161   : > { %2128 = vmatpush3.bf16.msra.mxu0 %v2115_v9  ;;  %2053 = vmatprep.mubr.msk.f32.mxu0 %vm2459_vm1, %v2456_v0  ;;  %v1149_v0 = vld [vmem:[%s3101_s8] sm:$0xff] }
 0x162   : > { %2129 = vmatprep.subr.bf16.mxu0 %v2457_v62 }
 0x165   : > { %2131 = vmatpush3.bf16.msra.mxu0 %v2118_v24 }
 0x166   : > { %2132 = vmatprep.subr.bf16.mxu0 %v2457_v62 }
 0x168   : > { %v1073_v49 = vpop.permute.xlu1 %1072 }
 0x169   : > { %2134 = vmatpush3.bf16.msra.mxu0 %v2121_v31 }
 0x16a   : > { %2135 = vmatprep.subr.bf16.mxu0 %v2457_v62  ;;  %v749_v62 = vpop.permute.xlu0 %748 }
 0x16c   : > { %v845_v1 = vpop.permute.xlu1 %844 }
 0x16d   : > { %2137 = vmatpush3.bf16.msra.mxu0 %v2124_v35 }
 0x16e   : > { %v850_v63 = vpop.permute.xlu0 %849 }
 0x170   : > { %2054 = vmatmul.mubr.msk.f32.vlgmr.msra.gmra.mrb[2].mxu0 %vm751_vm2, %v1068_v37  ;;  %v1168_v3 = vpop.permute.xlu1 %1167 }
 0x171   : > { %2058 = vmatprep.mubr.msk.f32.mxu0 %vm882_vm3, %v1149_v0 }
 0x172   : > { %v1173_v2 = vpop.permute.xlu0 %1172 }
 0x174   : > { %v855_v5 = vpop.permute.xlu1 %854 }
 0x176   : > { %v860_v4 = vpop.permute.xlu0 %859 }
 0x178   : > { %v2901_v9 = vpop.permute.xlu1 %1177 }
 0x17a   : > { %v1183_v8 = vpop.permute.xlu0 %1182 }
 0x17c   : > { %v865_v12 = vpop.permute.xlu1 %864 }
 0x17e   : > { %v870_v10 = vpop.permute.xlu0 %869 }
 0x180   : > { %v2905_v29 = vpop.permute.xlu1 %1187 }
 0x182   : > { %v2903_v24 = vpop.permute.xlu0 %1192 }
 0x233   : > { %v821_v39 = vpop.f32.mrb[0].mxu0 }
 0x234   : > { %v822_v40 = vadd.f32 %v821_v39, %v749_v62  ;;  %v2022_v41 = vpop.f32.mrb[1].mxu0  ;;  %v880_v39 = vpop.permute.xlu0 %879 }
 0x236   : > { %v825_v42 = vmax.f32 %v822_v40, 0.0 }
 0x238   : > { %2023 = vmatprep.subr.mxu1 %v825_v42 }
 0x239   : > { %2024 = vmatpush3.msra.mxu1 %v825_v42  ;;  %v875_v42 = vpop.permute.xlu1 %874 }
 0x23a   : > { %2026 = vmatmul.mubr.msk.f32.vlgmr.msra.gmra.mrb[0].mxu1 %vm882_vm3, %v827_v43 }
 0x23b   : > { %2028 = vmatprep.mubr.msk.f32.mxu1 %vm882_vm3, %v828_v44 }
 0x23e   : > { %2029 = vmatmul.mubr.msk.f32.gmra.mrb[2].mxu1 %vm882_vm3, %v829_v45 }
 0x23f   : > { %2031 = vmatprep.mubr.msk.f32.mxu1 %vm882_vm3, %v830_v46 }
 0x242   : > { %2032 = vmatmul.mubr.msk.f32.gmra.mrb[4].mxu1 %vm882_vm3, %v831_v47 }
 0x243   : > { %v1144_v50 = vpop.f32.mrb[2].mxu0  ;;  %2034 = vmatprep.mubr.msk.f32.mxu1 %vm882_vm3, %v832_v48 }
 0x244   : > { %v1145_v52 = vadd.f32 %v1144_v50, %v1073_v49  ;;  %v2055_v53 = vpop.f32.mrb[3].mxu0 }
 0x246   : > { %v1148_v54 = vmax.f32 %v1145_v52, 0.0  ;;  %2035 = vmatmul.mubr.msk.f32.gmra.mrb[6].mxu1 %vm882_vm3, %v833_v51 }
 0x248   : > { %2056 = vmatprep.subr.mxu0 %v1148_v54 }
 0x249   : > { %2057 = vmatpush3.msra.mxu0 %v1148_v54 }
 0x24a   : > { %2059 = vmatmul.mubr.msk.f32.vlgmr.msra.gmra.mrb[4].mxu0 %vm882_vm3, %v1150_v55 }
 0x24b   : > { %2061 = vmatprep.mubr.msk.f32.mxu0 %vm882_vm3, %v1151_v56 }
 0x24e   : > { %2062 = vmatmul.mubr.msk.f32.gmra.mrb[6].mxu0 %vm882_vm3, %v1152_v57 }
 0x24f   : > { %2064 = vmatprep.mubr.msk.f32.mxu0 %vm882_vm3, %v1153_v58 }
 0x252   : > { %2065 = vmatmul.mubr.msk.f32.gmra.mrb[8].mxu0 %vm882_vm3, %v1154_v59 }
 0x253   : > { %2067 = vmatprep.mubr.msk.f32.mxu0 %vm882_vm3, %v1155_v60 }
 0x256   : > { %2068 = vmatmul.mubr.msk.f32.gmra.mrb[10].mxu0 %vm882_vm3, %v1156_v61 }
 0x30d   : > { %v2027_v11 = vpop.f32.mrb[0].mxu1 }
 0x30e   : > { %v979_v13 = vadd.f32 %v2027_v11, %v850_v63  ;;  %v973_v14 = vpop.f32.mrb[1].mxu1 }
 0x30f   : > { %v974_v15 = vadd.f32 %v973_v14, %v845_v1 }
 0x310   : > { %v1013_v16 = vsub.f32 0.0, %v979_v13 }
 0x311   : > { %v1012_v19 = vsub.f32 0.0, %v974_v15  ;;  %v2030_v20 = vpop.f32.mrb[2].mxu1 }
 0x312   : > { %v1022_v21 = vmul.f32 1.442695, %v1013_v16  ;;  %v989_v22 = vadd.f32 %v2030_v20, %v860_v4  ;;  %v983_v23 = vpop.f32.mrb[3].mxu1 }
 0x313   : > { %v1020_v25 = vmul.f32 1.442695, %v1012_v19  ;;  %v984_v28 = vadd.f32 %v983_v23, %v855_v5 }
 0x314   : > { %2275 = vpow2.f32 %v1022_v21  ;;  %v1015_v30 = vsub.f32 0.0, %v989_v22 }
 0x315   : > { %2277 = vpow2.f32 %v1020_v25  ;;  %v1014_v31 = vsub.f32 0.0, %v984_v28  ;;  %v2033_v32 = vpop.f32.mrb[4].mxu1 }
 0x316   : > { %v1026_v35 = vmul.f32 1.442695, %v1015_v30  ;;  %v999_v36 = vadd.f32 %v2033_v32, %v870_v10  ;;  %v993_v37 = vpop.f32.mrb[5].mxu1 }
 0x317   : > { %v1024_v38 = vmul.f32 1.442695, %v1014_v31  ;;  %v994_v0 = vadd.f32 %v993_v37, %v865_v12  ;;  %v1203_v31 = vpop.permute.xlu0 %1202  ;;  %v1198_v37 = vpop.permute.xlu1 %1197 }
 0x318   : > { %2279 = vpow2.f32 %v1026_v35  ;;  %v1017_v62 = vsub.f32 0.0, %v999_v36 }
 0x319   : > { %2281 = vpow2.f32 %v1024_v38  ;;  %v1016_v40 = vsub.f32 0.0, %v994_v0  ;;  %v2036_v41 = vpop.f32.mrb[6].mxu1 }
 0x31a   : > { %v1030_v43 = vmul.f32 1.442695, %v1017_v62  ;;  %v1009_v44 = vadd.f32 %v2036_v41, %v880_v39  ;;  %v1003_v45 = vpop.f32.mrb[7].mxu1 }
 0x31b   : > { %v1028_v46 = vmul.f32 1.442695, %v1016_v40  ;;  %v1004_v47 = vadd.f32 %v1003_v45, %v875_v42 }
 0x31c   : > { %2283 = vpow2.f32 %v1030_v43  ;;  %v1019_v48 = vsub.f32 0.0, %v1009_v44 }
 0x31d   : > { %2285 = vpow2.f32 %v1028_v46  ;;  %v1018_v49 = vsub.f32 0.0, %v1004_v47  ;;  %v2060_v50 = vpop.f32.mrb[4].mxu0 }
 0x31e   : > { %v2276_v51 = vpop.eup %2275  ;;  %v1034_v52 = vmul.f32 1.442695, %v1019_v48  ;;  %v1301_v53 = vadd.f32 %v2060_v50, %v1173_v2  ;;  %v1295_v54 = vpop.f32.mrb[5].mxu0 }
 0x31f   : > { %v2278_v55 = vpop.eup %2277  ;;  %v1037_v56 = vadd.f32 1.0, %v2276_v51  ;;  %v1032_v57 = vmul.f32 1.442695, %v1018_v49  ;;  %v1296_v58 = vadd.f32 %v1295_v54, %v1168_v3 }
 0x320   : > { %v1036_v59 = vadd.f32 1.0, %v2278_v55  ;;  %2287 = vpow2.f32 %v1034_v52  ;;  %v1335_v60 = vsub.f32 0.0, %v1301_v53 }
 0x321   : > { %2289 = vrcp.f32 %v1037_v56  ;;  %v1334_v61 = vsub.f32 0.0, %v1296_v58  ;;  %v2063_v63 = vpop.f32.mrb[6].mxu0 }
 0x322   : > { %v2280_v1 = vpop.eup %2279  ;;  %2291 = vrcp.f32 %v1036_v59  ;;  %v1344_v4 = vmul.f32 1.442695, %v1335_v60  ;;  %v1311_v5 = vadd.f32 %v2063_v63, %v1183_v8  ;;  %v1305_v10 = vpop.f32.mrb[7].mxu0 }
 0x323   : > { %v2282_v11 = vpop.eup %2281  ;;  %v1039_v12 = vadd.f32 1.0, %v2280_v1  ;;  %2293 = vpow2.f32 %v1032_v57  ;;  %v1342_v2 = vmul.f32 1.442695, %v1334_v61  ;;  %v1306_v13 = vadd.f32 %v1305_v10, %v2901_v9 }
 0x324   : > { %v1038_v14 = vadd.f32 1.0, %v2282_v11  ;;  %2295 = vpow2.f32 %v1344_v4  ;;  %v1337_v3 = vsub.f32 0.0, %v1311_v5 }
 0x325   : > { %2297 = vrcp.f32 %v1039_v12  ;;  %v1336_v15 = vsub.f32 0.0, %v1306_v13  ;;  %v2066_v16 = vpop.f32.mrb[8].mxu0 }
 0x326   : > { %v2284_v19 = vpop.eup %2283  ;;  %2299 = vrcp.f32 %v1038_v14  ;;  %v1348_v20 = vmul.f32 1.442695, %v1337_v3  ;;  %v1321_v21 = vadd.f32 %v2066_v16, %v2903_v24  ;;  %v1315_v22 = vpop.f32.mrb[9].mxu0 }
 0x327   : > { %v2286_v8 = vpop.eup %2285  ;;  %v1041_v23 = vadd.f32 1.0, %v2284_v19  ;;  %2301 = vpow2.f32 %v1342_v2  ;;  %v1346_v25 = vmul.f32 1.442695, %v1336_v15  ;;  %v1316_v28 = vadd.f32 %v1315_v22, %v2905_v29 }
 0x328   : > { %v1040_v30 = vadd.f32 1.0, %v2286_v8  ;;  %2303 = vpow2.f32 %v1348_v20  ;;  %v1339_v9 = vsub.f32 0.0, %v1321_v21 }
 0x329   : > { %2305 = vrcp.f32 %v1041_v23  ;;  %v1338_v32 = vsub.f32 0.0, %v1316_v28  ;;  %v2069_v35 = vpop.f32.mrb[10].mxu0 }
 0x32a   : > { %v2288_v36 = vpop.eup %2287  ;;  %2307 = vrcp.f32 %v1040_v30  ;;  %v1352_v38 = vmul.f32 1.442695, %v1339_v9  ;;  %v1331_v0 = vadd.f32 %v2069_v35, %v1203_v31  ;;  %v1325_v24 = vpop.f32.mrb[11].mxu0 }
 0x32b   : > { %v2290_v62 = vpop.eup %2289  ;;  %v1043_v39 = vadd.f32 1.0, %v2288_v36  ;;  %2309 = vpow2.f32 %v1346_v25  ;;  %v1350_v40 = vmul.f32 1.442695, %v1338_v32  ;;  %v1326_v41 = vadd.f32 %v1325_v24, %v1198_v37  ;;  %v1479_v36 = vld [vmem:[%s3104_s11 + $0x8] sm:$0xff] }
 0x32c   : > { %v2292_v42 = vpop.eup %2291  ;;  %2311 = vpow2.f32 %v1352_v38  ;;  %v1341_v29 = vsub.f32 0.0, %v1331_v0  ;;  %v1061_v43 = vmul.f32 %v2290_v62, %v2794_v7 }
 0x32d   : > { %v2294_v44 = vpop.eup %2293  ;;  %2313 = vrcp.f32 %v1043_v39  ;;  %v1340_v45 = vsub.f32 0.0, %v1326_v41  ;;  %v1060_v46 = vmul.f32 %v2292_v42, %v2792_v6 }
 0x32e   : > { %v2296_v47 = vpop.eup %2295  ;;  %v1042_v48 = vadd.f32 1.0, %v2294_v44  ;;  %2315 = vpow2.f32 %v1350_v40  ;;  %v1356_v49 = vmul.f32 1.442695, %v1341_v29  ;;  %v1481_v40 = vld [vmem:[%s3104_s11 + $0x18] sm:$0xff] }
 0x32f   : > { %v2298_v50 = vpop.eup %2297  ;;  %v1359_v51 = vadd.f32 1.0, %v2296_v47  ;;  %v1354_v52 = vmul.f32 1.442695, %v1340_v45  ;;  %v2235_v53 = vpack.i.bf16 %v1061_v43, %v1060_v46 }
 0x330   : > { %v2300_v54 = vpop.eup %2299  ;;  %2317 = vrcp.f32 %v1042_v48  ;;  %v1063_v55 = vmul.f32 %v2298_v50, %v2803_v18 }
 0x331   : > { %v2302_v56 = vpop.eup %2301  ;;  %2319 = vrcp.f32 %v1359_v51  ;;  %2236 = vrot.lane.b32.xlu0 %v2235_v53, %s2458_s16  ;;  %v1062_v57 = vmul.f32 %v2300_v54, %v2801_v17  ;;  %v1485_v51 = vld [vmem:[%s3104_s11 + $0x38] sm:$0xff] }
 0x332   : > { %v2304_v58 = vpop.eup %2303  ;;  %v1358_v59 = vadd.f32 1.0, %v2302_v56  ;;  %2321 = vpow2.f32 %v1356_v49  ;;  %v1482_v56 = vld [vmem:[%s3104_s11 + $0x20] sm:$0xff] }
 0x333   : > { %v2306_v60 = vpop.eup %2305  ;;  %v1361_v61 = vadd.f32 1.0, %v2304_v58  ;;  %2323 = vpow2.f32 %v1354_v52  ;;  %v2240_v63 = vpack.i.bf16 %v1063_v55, %v1062_v57  ;;  %v1484_v58 = vld [vmem:[%s3104_s11 + $0x30] sm:$0xff] }
 0x334   : > { %v2308_v1 = vpop.eup %2307  ;;  %2325 = vrcp.f32 %v1358_v59  ;;  %v1065_v4 = vmul.f32 %v2306_v60, %v2811_v27 }
 0x335   : > { %v2310_v5 = vpop.eup %2309  ;;  %2327 = vrcp.f32 %v1361_v61  ;;  %2241 = vrot.lane.b32.xlu0 %v2240_v63, %s2458_s16  ;;  %v1064_v10 = vmul.f32 %v2308_v1, %v2809_v26 }
 0x336   : > { %v2312_v11 = vpop.eup %2311  ;;  %v1360_v12 = vadd.f32 1.0, %v2310_v5 }
 0x337   : > { %v2314_v2 = vpop.eup %2313  ;;  %v1363_v13 = vadd.f32 1.0, %v2312_v11  ;;  %v2245_v14 = vpack.i.bf16 %v1065_v4, %v1064_v10 }
 0x338   : > { %v2316_v3 = vpop.eup %2315  ;;  %2329 = vrcp.f32 %v1360_v12  ;;  %v1067_v16 = vmul.f32 %v2314_v2, %v2820_v34 }
 0x339   : > { %2331 = vrcp.f32 %v1363_v13  ;;  %v1362_v15 = vadd.f32 1.0, %v2316_v3  ;;  %2246 = vrot.lane.b32.xlu0 %v2245_v14, %s2458_s16 }
 0x33a   : > { %v2318_v19 = vpop.eup %2317 }
 0x33b   : > { %v2320_v20 = vpop.eup %2319  ;;  %2333 = vrcp.f32 %v1362_v15  ;;  %v1066_v21 = vmul.f32 %v2318_v19, %v2818_v33 }
 0x33c   : > { %v2322_v22 = vpop.eup %2321  ;;  %v1383_v8 = vmul.f32 %v2320_v20, %v2794_v7 }
 0x33d   : > { %v2324_v23 = vpop.eup %2323  ;;  %v1365_v25 = vadd.f32 1.0, %v2322_v22  ;;  %v2270_v28 = vpack.i.bf16 %v1067_v16, %v1066_v21 }
 0x33e   : > { %v2326_v30 = vpop.eup %2325  ;;  %v1364_v9 = vadd.f32 1.0, %v2324_v23  ;;  %v1463_v31 = vsel %vm531_vm0, %v1061_v43, %v1383_v8 }
 0x33f   : > { %v2328_v32 = vpop.eup %2327  ;;  %2335 = vrcp.f32 %v1365_v25  ;;  %2271 = vrot.lane.b32.xlu0 %v2270_v28, %s2458_s16  ;;  %v1382_v35 = vmul.f32 %v2326_v30, %v2792_v6  ;;  %s2461_s16 = smov 127  }
 0x340   : > { %2337 = vrcp.f32 %v1364_v9  ;;  %v1385_v7 = vmul.f32 %v2328_v32, %v2803_v18 }
 0x341   : > { %v2250_v37 = vpack.i.bf16 %v1383_v8, %v1382_v35  ;;  %v1462_v38 = vsel %vm531_vm0, %v1060_v46, %v1382_v35 }
 0x342   : > { %v2330_v0 = vpop.eup %2329  ;;  %v2930_v24 = vpack.c.bf16 %v1463_v31, %v1462_v38  ;;  %v1465_v62 = vsel %vm531_vm0, %v1063_v55, %v1385_v7 }
 0x343   : > { %v2332_v39 = vpop.eup %2331  ;;  %1493 = vperm.xlu0 %2233, %v1479_v36   ;;  %2251 = vrot.lane.b32.xlu1 %v2250_v37, %s2461_s16  ;;  %v1384_v6 = vmul.f32 %v2330_v0, %v2801_v17  ;;  %v1483_v17 = vld [vmem:[%s3104_s11 + $0x28] sm:$0xff] }
 0x344   : > { %v1387_v18 = vmul.f32 %v2332_v39, %v2811_v27 }
 0x345   : > { %v2334_v41 = vpop.eup %2333  ;;  %v2255_v42 = vpack.i.bf16 %v1385_v7, %v1384_v6  ;;  %v1464_v29 = vsel %vm531_vm0, %v1062_v57, %v1384_v6  ;;  %v1470_v57 = vld [vmem:[%s3103_s10] sm:$0xff]  ;;  %v1471_v6 = vld [vmem:[%s3103_s10 + $0x8] sm:$0xff] }
 0x346   : > { %v1386_v43 = vmul.f32 %v2334_v41, %v2809_v26  ;;  %v2941_v44 = vpack.c.bf16 %v1465_v62, %v1464_v29  ;;  %v1467_v45 = vsel %vm531_vm0, %v1065_v4, %v1387_v18  ;;  %2102 = vmatprep.mubr.f32.mxu1 %v1470_v57  ;;  %v1475_v41 = vld [vmem:[%s3103_s10 + $0x28] sm:$0xff]  ;;  %v1477_v29 = vld [vmem:[%s3103_s10 + $0x38] sm:$0xff] }
 0x347   : > { %1503 = vperm.xlu0 %2233, %v1481_v40   ;;  %2256 = vrot.lane.b32.xlu1 %v2255_v42, %s2461_s16  ;;  %v1473_v40 = vld [vmem:[%s3103_s10 + $0x18] sm:$0xff]  ;;  %v1476_v42 = vld [vmem:[%s3103_s10 + $0x30] sm:$0xff] }
 0x348   : > { %v2260_v46 = vpack.i.bf16 %v1387_v18, %v1386_v43  ;;  %v1466_v27 = vsel %vm531_vm0, %v1064_v10, %v1386_v43  ;;  %v1474_v18 = vld [vmem:[%s3103_s10 + $0x20] sm:$0xff] }
 0x349   : > { %v2336_v47 = vpop.eup %2335  ;;  %v2949_v48 = vpack.c.bf16 %v1467_v45, %v1466_v27 }
 0x34a   : > { %v2338_v49 = vpop.eup %2337  ;;  %v1389_v26 = vmul.f32 %v2336_v47, %v2820_v34  ;;  %v1478_v34 = vld [vmem:[%s3104_s11] sm:$0xff] }
 0x34b   : > { %1513 = vperm.xlu0 %2233, %v1483_v17   ;;  %2261 = vrot.lane.b32.xlu1 %v2260_v46, %s2461_s16  ;;  %v1388_v50 = vmul.f32 %v2338_v49, %v2818_v33  ;;  %v1480_v33 = vld [vmem:[%s3104_s11 + $0x10] sm:$0xff] }
 0x34c   : > { %v1469_v52 = vsel %vm531_vm0, %v1067_v16, %v1389_v26 }
 0x34d   : > { %v2265_v53 = vpack.i.bf16 %v1389_v26, %v1388_v50  ;;  %v1468_v54 = vsel %vm531_vm0, %v1066_v21, %v1388_v50 }
 0x34e   : > { %v2959_v55 = vpack.c.bf16 %v1469_v52, %v1468_v54 }
 0x34f   : > { %1523 = vperm.xlu0 %2233, %v1485_v51   ;;  %2266 = vrot.lane.b32.xlu1 %v2265_v53, %s2461_s16 }
 0x353   : > { %1488 = vperm.xlu1 %2234, %v1478_v34  }
 0x357   : > { %1498 = vperm.xlu1 %2234, %v1480_v33  }
 0x35b   : > { %1508 = vperm.xlu1 %2234, %v1482_v56  }
 0x35f   : > { %1518 = vperm.xlu1 %2234, %v1484_v58  }
 0x3a3   : > { %v2237_v59 = vpop.permute.xlu0 %2236 }
 0x3a4   : > { %v2239_v63 = vunpack.i.h.bf16 %v2237_v59  ;;  %v2238_v1 = vunpack.i.l.bf16 %v2237_v59 }
 0x3a7   : > { %v2242_v60 = vpop.permute.xlu0 %2241 }
 0x3a8   : > { %v2244_v14 = vunpack.i.h.bf16 %v2242_v60  ;;  %v2243_v3 = vunpack.i.l.bf16 %v2242_v60 }
 0x3ab   : > { %v2247_v12 = vpop.permute.xlu0 %2246 }
 0x3ac   : > { %v2249_v8 = vunpack.i.h.bf16 %v2247_v12  ;;  %v2248_v23 = vunpack.i.l.bf16 %v2247_v12 }
 0x3b1   : > { %v2272_v30 = vpop.permute.xlu0 %2271 }
 0x3b2   : > { %v2274_v36 = vunpack.i.h.bf16 %v2272_v30  ;;  %v2273_v7 = vunpack.i.l.bf16 %v2272_v30 }
 0x3b5   : > { %v2252_v61 = vpop.permute.xlu1 %2251 }
 0x3b6   : > { %v2254_v4 = vunpack.i.h.bf16 %v2252_v61  ;;  %v2253_v5 = vunpack.i.l.bf16 %v2252_v61 }
 0x3b8   : > { %v1454_v10 = vsel %vm531_vm0, %v2253_v5, %v2238_v1  ;;  %v1455_v11 = vsel %vm531_vm0, %v2254_v4, %v2239_v63 }
 0x3b9   : > { %v2257_v2 = vpop.permute.xlu1 %2256  ;;  %v2138_v13 = vpack.c.bf16 %v1455_v11, %v1454_v10 }
 0x3ba   : > { %v2259_v15 = vunpack.i.h.bf16 %v2257_v2  ;;  %v2258_v16 = vunpack.i.l.bf16 %v2257_v2 }
 0x3bb   : > { %2139 = vmatprep.subr.bf16.mxu1 %v2138_v13 }
 0x3bc   : > { %2141 = vmatpush3.bf16.msra.mxu1 %v2138_v13  ;;  %v1456_v19 = vsel %vm531_vm0, %v2258_v16, %v2243_v3  ;;  %v1457_v20 = vsel %vm531_vm0, %v2259_v15, %v2244_v14 }
 0x3bd   : > { %v2262_v21 = vpop.permute.xlu1 %2261  ;;  %v2142_v22 = vpack.c.bf16 %v1457_v20, %v1456_v19 }
 0x3be   : > { %v2264_v25 = vunpack.i.h.bf16 %v2262_v21  ;;  %v2263_v28 = vunpack.i.l.bf16 %v2262_v21 }
 0x3bf   : > { %2143 = vmatprep.subr.bf16.mxu1 %v2142_v22 }
 0x3c0   : > { %2145 = vmatpush3.bf16.msra.mxu1 %v2142_v22  ;;  %v1458_v9 = vsel %vm531_vm0, %v2263_v28, %v2248_v23  ;;  %v1459_v31 = vsel %vm531_vm0, %v2264_v25, %v2249_v8 }
 0x3c1   : > { %v2267_v32 = vpop.permute.xlu1 %2266  ;;  %v2146_v35 = vpack.c.bf16 %v1459_v31, %v1458_v9 }
 0x3c2   : > { %v2269_v37 = vunpack.i.h.bf16 %v2267_v32  ;;  %v2268_v38 = vunpack.i.l.bf16 %v2267_v32 }
 0x3c3   : > { %2147 = vmatprep.subr.bf16.mxu1 %v2146_v35 }
 0x3c4   : > { %2149 = vmatpush3.bf16.msra.mxu1 %v2146_v35  ;;  %v1460_v0 = vsel %vm531_vm0, %v2268_v38, %v2273_v7  ;;  %v1461_v62 = vsel %vm531_vm0, %v2269_v37, %v2274_v36 }
 0x3c5   : > { %v2150_v39 = vpack.c.bf16 %v1461_v62, %v1460_v0 }
 0x3c7   : > { %2151 = vmatprep.subr.bf16.mxu1 %v2150_v39 }
 0x3c8   : > { %2153 = vmatpush3.bf16.msra.mxu1 %v2150_v39 }
 0x3c9   : > { %2155 = vmatprep.subr.bf16.mxu1 %v2930_v24 }
 0x3cc   : > { %2157 = vmatpush3.bf16.msra.mxu1 %v2930_v24  ;;  %v1472_v24 = vld [vmem:[%s3103_s10 + $0x10] sm:$0xff] }
 0x3cd   : > { %2159 = vmatprep.subr.bf16.mxu1 %v2941_v44 }
 0x3d0   : > { %2161 = vmatpush3.bf16.msra.mxu1 %v2941_v44  ;;  %v1494_v44 = vpop.permute.xlu0 %1493 }
 0x3d1   : > { %2163 = vmatprep.subr.bf16.mxu1 %v2949_v48 }
 0x3d2   : > { %v1489_v43 = vpop.permute.xlu1 %1488 }
 0x3d4   : > { %2165 = vmatpush3.bf16.msra.mxu1 %v2949_v48  ;;  %v1504_v47 = vpop.permute.xlu0 %1503 }
 0x3d5   : > { %2167 = vmatprep.subr.bf16.mxu1 %v2959_v55 }
 0x3d6   : > { %v1499_v17 = vpop.permute.xlu1 %1498 }
 0x3d8   : > { %2169 = vmatpush3.bf16.msra.mxu1 %v2959_v55  ;;  %v1514_v34 = vpop.permute.xlu0 %1513 }
 0x3da   : > { %v1509_v53 = vpop.permute.xlu1 %1508 }
 0x3db   : > { %2103 = vmatmul.mubr.f32.vlgmr.msra.gmra.mrb[8].mxu1 %v1471_v6 }
 0x3dc   : > { %2105 = vmatprep.mubr.f32.mxu1 %v1472_v24  ;;  %v1524_v4 = vpop.permute.xlu0 %1523 }
 0x3de   : > { %v1519_v63 = vpop.permute.xlu1 %1518 }
 0x3df   : > { %2106 = vmatmul.mubr.f32.gmra.mrb[10].mxu1 %v1473_v40 }
 0x3e0   : > { %2108 = vmatprep.mubr.f32.mxu1 %v1474_v18 }
 0x3e3   : > { %2109 = vmatmul.mubr.f32.gmra.mrb[12].mxu1 %v1475_v41 }
 0x3e4   : > { %2111 = vmatprep.mubr.f32.mxu1 %v1476_v42 }
 0x3e7   : > { %2112 = vmatmul.mubr.f32.gmra.mrb[14].mxu1 %v1477_v29 }
 0x4ae   : > { %v2104_v45 = vpop.f32.mrb[8].mxu1 }
 0x4af   : > { %v1598_v46 = vadd.f32 %v2104_v45, %v1494_v44  ;;  %v1592_v27 = vpop.f32.mrb[9].mxu1 }
 0x4b0   : > { %v1593_v48 = vadd.f32 %v1592_v27, %v1489_v43 }
 0x4b1   : > { %v1635_v49 = vsel %vm1631_vm4, %v1598_v46, -inf }
 0x4b2   : > { %1636 = vmax.xlane.f32.xlu0 %v1635_v49  ;;  %v2107_v26 = vpop.f32.mrb[10].mxu1  ;;  %v1632_v50 = vsel %vm1631_vm4, %v1593_v48, -inf }
 0x4b3   : > { %v1608_v51 = vadd.f32 %v2107_v26, %v1504_v47  ;;  %v1602_v52 = vpop.f32.mrb[11].mxu1  ;;  %1633 = vmax.xlane.f32.xlu1 %v1632_v50 }
 0x4b4   : > { %v1603_v54 = vadd.f32 %v1602_v52, %v1499_v17 }
 0x4b5   : > { %v1641_v55 = vsel %vm1631_vm4, %v1608_v51, -inf }
 0x4b6   : > { %1642 = vmax.xlane.f32.xlu0 %v1641_v55  ;;  %v2110_v33 = vpop.f32.mrb[12].mxu1  ;;  %v1638_v59 = vsel %vm1631_vm4, %v1603_v54, -inf }
 0x4b7   : > { %v1612_v56 = vpop.f32.mrb[13].mxu1  ;;  %v1618_v58 = vadd.f32 %v2110_v33, %v1514_v34 }
 0x4b8   : > { %v1613_v57 = vadd.f32 %v1612_v56, %v1509_v53 }
 0x4b9   : > { %v1647_v11 = vsel %vm1631_vm4, %v1618_v58, -inf }
 0x4ba   : > { %v2113_v60 = vpop.f32.mrb[14].mxu1  ;;  %1639 = vmax.xlane.f32.xlu0 %v1638_v59  ;;  %v1644_v61 = vsel %vm1631_vm4, %v1613_v57, -inf }
 0x4bb   : > { %v1622_v1 = vpop.f32.mrb[15].mxu1  ;;  %1645 = vmax.xlane.f32.xlu1 %v1644_v61  ;;  %v1628_v10 = vadd.f32 %v2113_v60, %v1524_v4 }
 0x4bc   : > { %v1623_v5 = vadd.f32 %v1622_v1, %v1519_v63 }
 0x4bd   : > { %v1653_v2 = vsel %vm1631_vm4, %v1628_v10, -inf }
 0x4be   : > { %1648 = vmax.xlane.f32.xlu0 %v1647_v11  ;;  %v1650_v12 = vsel %vm1631_vm4, %v1623_v5, -inf }
 0x4bf   : > { %1651 = vmax.xlane.f32.xlu1 %v1650_v12 }
 0x4c2   : > { %1654 = vmax.xlane.f32.xlu0 %v1653_v2 }
 0x53f   : > { %v1637_v13 = vpop.xlane.xlu0 %1636 }
 0x540   : > { %v1657_v14 = vsub.f32 %v1598_v46, %v1637_v13  ;;  %v1634_v3 = vpop.xlane.xlu1 %1633 }
 0x541   : > { %v1656_v15 = vsub.f32 %v1593_v48, %v1634_v3 }
 0x542   : > { %v1666_v16 = vmul.f32 1.442695, %v1657_v14 }
 0x543   : > { %v1664_v19 = vmul.f32 1.442695, %v1656_v15  ;;  %v1643_v20 = vpop.xlane.xlu0 %1642 }
 0x544   : > { %2339 = vpow2.f32 %v1666_v16  ;;  %v1659_v21 = vsub.f32 %v1608_v51, %v1643_v20 }
 0x545   : > { %2341 = vpow2.f32 %v1664_v19 }
 0x546   : > { %v1670_v22 = vmul.f32 1.442695, %v1659_v21 }
 0x547   : > { %v1640_v8 = vpop.xlane.xlu0 %1639 }
 0x548   : > { %2343 = vpow2.f32 %v1670_v22  ;;  %v1658_v23 = vsub.f32 %v1603_v54, %v1640_v8  ;;  %v1646_v25 = vpop.xlane.xlu1 %1645 }
 0x549   : > { %v1660_v28 = vsub.f32 %v1613_v57, %v1646_v25 }
 0x54a   : > { %v1668_v30 = vmul.f32 1.442695, %v1658_v23 }
 0x54b   : > { %v1672_v9 = vmul.f32 1.442695, %v1660_v28  ;;  %v1649_v31 = vpop.xlane.xlu0 %1648 }
 0x54c   : > { %2345 = vpow2.f32 %v1668_v30  ;;  %v1661_v32 = vsub.f32 %v1618_v58, %v1649_v31  ;;  %v1652_v35 = vpop.xlane.xlu1 %1651 }
 0x54d   : > { %v1662_v36 = vsub.f32 %v1623_v5, %v1652_v35  ;;  %2347 = vpow2.f32 %v1672_v9 }
 0x54e   : > { %v2340_v7 = vpop.eup %2339  ;;  %v1674_v37 = vmul.f32 1.442695, %v1661_v32 }
 0x54f   : > { %v2342_v38 = vpop.eup %2341  ;;  %v1676_v0 = vmul.f32 1.442695, %v1662_v36  ;;  %v1655_v62 = vpop.xlane.xlu0 %1654  ;;  %v1691_v39 = vsel %vm1631_vm4, %v2340_v7, 0.0  ;;  %v1681_v52 = vmul.f32 2.0, %v2340_v7 }
 0x550   : > { %2349 = vpow2.f32 %v1674_v37  ;;  %v1663_v6 = vsub.f32 %v1628_v10, %v1655_v62  ;;  %1692 = vadd.xlane.f32.xlu0 %v1691_v39  ;;  %v1688_v24 = vsel %vm1631_vm4, %v2342_v38, 0.0  ;;  %v1680_v54 = vmul.f32 2.0, %v2342_v38 }
 0x551   : > { %1689 = vadd.xlane.f32.xlu1 %v1688_v24  ;;  %2351 = vpow2.f32 %v1676_v0 }
 0x552   : > { %v2344_v40 = vpop.eup %2343  ;;  %v1678_v18 = vmul.f32 1.442695, %v1663_v6 }
 0x553   : > { %v1697_v41 = vsel %vm1631_vm4, %v2344_v40, 0.0  ;;  %v1683_v58 = vmul.f32 2.0, %v2344_v40 }
 0x554   : > { %2353 = vpow2.f32 %v1678_v18  ;;  %1698 = vadd.xlane.f32.xlu0 %v1697_v41 }
 0x556   : > { %v2346_v42 = vpop.eup %2345 }
 0x557   : > { %v1694_v29 = vsel %vm1631_vm4, %v2346_v42, 0.0  ;;  %v2348_v43 = vpop.eup %2347  ;;  %v1682_v1 = vmul.f32 2.0, %v2346_v42 }
 0x558   : > { %1695 = vadd.xlane.f32.xlu1 %v1694_v29  ;;  %v1700_v17 = vsel %vm1631_vm4, %v2348_v43, 0.0  ;;  %v1684_v12 = vmul.f32 2.0, %v2348_v43 }
 0x55a   : > { %v2350_v44 = vpop.eup %2349 }
 0x55b   : > { %v1703_v45 = vsel %vm1631_vm4, %v2350_v44, 0.0  ;;  %v2352_v46 = vpop.eup %2351  ;;  %v1685_v10 = vmul.f32 2.0, %v2350_v44 }
 0x55c   : > { %1704 = vadd.xlane.f32.xlu0 %v1703_v45  ;;  %1701 = vadd.xlane.f32.xlu1 %v1700_v17  ;;  %v1706_v48 = vsel %vm1631_vm4, %v2352_v46, 0.0  ;;  %v1686_v16 = vmul.f32 2.0, %v2352_v46 }
 0x55e   : > { %v2354_v27 = vpop.eup %2353 }
 0x55f   : > { %v1709_v47 = vsel %vm1631_vm4, %v2354_v27, 0.0  ;;  %v1687_v3 = vmul.f32 2.0, %v2354_v27 }
 0x560   : > { %1710 = vadd.xlane.f32.xlu0 %v1709_v47  ;;  %1707 = vadd.xlane.f32.xlu1 %v1706_v48 }
 0x5dd   : > { %v1693_v49 = vpop.xlane.xlu0 %1692 }
 0x5de   : > { %2355 = vrcp.f32 %v1693_v49  ;;  %v1690_v26 = vpop.xlane.xlu1 %1689 }
 0x5df   : > { %2357 = vrcp.f32 %v1690_v26 }
 0x5e1   : > { %v1699_v50 = vpop.xlane.xlu0 %1698 }
 0x5e2   : > { %2359 = vrcp.f32 %v1699_v50 }
 0x5e5   : > { %v1696_v51 = vpop.xlane.xlu1 %1695 }
 0x5e6   : > { %2361 = vrcp.f32 %v1696_v51 }
 0x5e8   : > { %v2356_v53 = vpop.eup %2355 }
 0x5e9   : > { %v2358_v55 = vpop.eup %2357  ;;  %v1705_v34 = vpop.xlane.xlu0 %1704  ;;  %v1715_v56 = vmul.f32 %v2356_v53, %v1681_v52 }
 0x5ea   : > { %v1702_v33 = vpop.xlane.xlu1 %1701  ;;  %2363 = vrcp.f32 %v1705_v34  ;;  %v1713_v57 = vmul.f32 %v2358_v55, %v1680_v54 }
 0x5eb   : > { %2365 = vrcp.f32 %v1702_v33  ;;  %1746 = vrot.lane.b32.xlu0 %v1715_v56, %s2461_s16  ;;  %1729 = vst.msk [vmem:[%s3036_s14 + $0x8] sm:$0xff] %vm531_vm0, %v1715_v56 }
 0x5ec   : > { %v2360_v59 = vpop.eup %2359  ;;  %1744 = vrot.lane.b32.xlu1 %v1713_v57, %s2461_s16  ;;  %1728 = vst.msk [vmem:[%s3036_s14] sm:$0xff] %vm531_vm0, %v1713_v57 }
 0x5ed   : > { %v1711_v60 = vpop.xlane.xlu0 %1710  ;;  %v1719_v63 = vmul.f32 %v2360_v59, %v1683_v58 }
 0x5ee   : > { %v1708_v61 = vpop.xlane.xlu1 %1707  ;;  %2367 = vrcp.f32 %v1711_v60 }
 0x5ef   : > { %2369 = vrcp.f32 %v1708_v61  ;;  %1731 = vst.msk [vmem:[%s3036_s14 + $0x18] sm:$0xff] %vm531_vm0, %v1719_v63 }
 0x5f0   : > { %v2362_v4 = vpop.eup %2361  ;;  %1750 = vrot.lane.b32.xlu1 %v1719_v63, %s2461_s16 }
 0x5f1   : > { %v1717_v5 = vmul.f32 %v2362_v4, %v1682_v1 }
 0x5f3   : > { %1730 = vst.msk [vmem:[%s3036_s14 + $0x10] sm:$0xff] %vm531_vm0, %v1717_v5 }
 0x5f4   : > { %v2364_v11 = vpop.eup %2363  ;;  %1748 = vrot.lane.b32.xlu1 %v1717_v5, %s2461_s16 }
 0x5f5   : > { %v2366_v2 = vpop.eup %2365  ;;  %v1723_v13 = vmul.f32 %v2364_v11, %v1685_v10 }
 0x5f6   : > { %v1721_v14 = vmul.f32 %v2366_v2, %v1684_v12 }
 0x5f7   : > { %1754 = vrot.lane.b32.xlu0 %v1723_v13, %s2461_s16  ;;  %1733 = vst.msk [vmem:[%s3036_s14 + $0x28] sm:$0xff] %vm531_vm0, %v1723_v13 }
 0x5f8   : > { %v2368_v15 = vpop.eup %2367  ;;  %1752 = vrot.lane.b32.xlu1 %v1721_v14, %s2461_s16  ;;  %1732 = vst.msk [vmem:[%s3036_s14 + $0x20] sm:$0xff] %vm531_vm0, %v1721_v14 }
 0x5f9   : > { %v2370_v19 = vpop.eup %2369  ;;  %v1727_v20 = vmul.f32 %v2368_v15, %v1687_v3 }
 0x5fa   : > { %v1725_v21 = vmul.f32 %v2370_v19, %v1686_v16 }
 0x5fb   : > { %1758 = vrot.lane.b32.xlu0 %v1727_v20, %s2461_s16  ;;  %1735 = vst.msk [vmem:[%s3036_s14 + $0x38] sm:$0xff] %vm531_vm0, %v1727_v20 }
 0x5fc   : > { %1756 = vrot.lane.b32.xlu1 %v1725_v21, %s2461_s16  ;;  %1734 = vst.msk [vmem:[%s3036_s14 + $0x30] sm:$0xff] %vm531_vm0, %v1725_v21 }
 0x65d   : > { %v1747_v22 = vpop.permute.xlu0 %1746 }
 0x65e   : > { %1769 = vst.msk [vmem:[%s526_s23 + $0x8] sm:$0xff] %vm531_vm0, %v1747_v22  ;;  %v1745_v8 = vpop.permute.xlu1 %1744 }
 0x65f   : > { %1768 = vst.msk [vmem:[%s526_s23] sm:$0xff] %vm531_vm0, %v1745_v8 }
 0x662   : > { %v1751_v23 = vpop.permute.xlu1 %1750 }
 0x663   : > { %1771 = vst.msk [vmem:[%s526_s23 + $0x18] sm:$0xff] %vm531_vm0, %v1751_v23 }
 0x666   : > { %v1749_v25 = vpop.permute.xlu1 %1748 }
 0x667   : > { %1770 = vst.msk [vmem:[%s526_s23 + $0x10] sm:$0xff] %vm531_vm0, %v1749_v25 }
 0x669   : > { %v1755_v28 = vpop.permute.xlu0 %1754 }
 0x66a   : > { %1773 = vst.msk [vmem:[%s526_s23 + $0x28] sm:$0xff] %vm531_vm0, %v1755_v28  ;;  %v1753_v30 = vpop.permute.xlu1 %1752 }
 0x66b   : > { %1772 = vst.msk [vmem:[%s526_s23 + $0x20] sm:$0xff] %vm531_vm0, %v1753_v30 }
 0x66d   : > { %v1759_v9 = vpop.permute.xlu0 %1758 }
 0x66e   : > { %1775 = vst.msk [vmem:[%s526_s23 + $0x38] sm:$0xff] %vm531_vm0, %v1759_v9  ;;  %v1757_v31 = vpop.permute.xlu1 %1756 }
 0x66f   : > { %1774 = vst.msk [vmem:[%s526_s23 + $0x30] sm:$0xff] %vm531_vm0, %v1757_v31 }
 0x670 PF: > { %s27_s30 = sadd.s32 1, %s2451_s30   ;;  %s3114_s25 = smov %s2435_s26 }
 0x671   : > { %p24_p9 = scmp.ge.s32.totalorder %s27_s30, 4   ;;  %s3115_s26 = smov %s2439_s27 }
 0x672   : > { %s3116_s27 = smov %s2581_s20  ;;  %s3117_s28 = smov %s2447_s29 }
 0x673   : > { %s3118_s29 = smov %s3120_s15  ;;  %26 = sbr.rel (!%p24_p9) target bundleno = 7 (0x7), region = 131 }
 0x67a   :  { %1813 = vsyncpa [#allocation5], 1 }
 0x67b   :  { %1815 = vsyncpa [#allocation5 + $0x1], 1 }

</bundles_post_ra>
